<compile_context>
chip_gen: v7x
topology: tpu7x:2x2x1
jax: 0.10.0
libtpu: 0.0.40
codegen_flags: <defaults>
</compile_context>

<pallas_src>
import jax
import jax.numpy as jnp
from jax.experimental import pallas as pl
from jax.experimental.pallas import tpu as pltpu

LANES = 128
OUT_PAD = 8          # padded output width (2 real columns + 6 zero columns)


def baseline2_mlp_kernel(x1_ref, x2_ref,
                         w1_ref, b1_ref, w2_ref, b2_ref, w3_ref, b3_ref,
                         w4_ref, b4_ref, w5_ref, b5_ref,
                         o_ref):
    # Inputs arrive in their native f32 layout; cast to bf16 per tile (VPU).
    x1 = x1_ref[...].astype(jnp.bfloat16)
    x2 = x2_ref[...].astype(jnp.bfloat16)

    # ----- branch 1: fc1 -> relu -> (dropout=id) -> fc2 -> relu -> fc3 -> relu
    h = jnp.dot(x1, w1_ref[...], preferred_element_type=jnp.float32)
    h = jnp.maximum(h + b1_ref[...], 0.0)
    # fc2: (TM, 256) @ (256, 128)  [64 real output cols, zero-padded]
    h = jnp.dot(h.astype(jnp.bfloat16), w2_ref[...],
                preferred_element_type=jnp.float32)
    h = jnp.maximum(h + b2_ref[...], 0.0)
    # fc3: (TM, 128) @ (128, 128)  [real cols 0..7; pad cols are exactly zero]
    h = jnp.dot(h.astype(jnp.bfloat16), w3_ref[...],
                preferred_element_type=jnp.float32)
    h = jnp.maximum(h + b3_ref[...], 0.0)

    # ----- branch 2: fc4 -> relu.
    # W4/b4 were packed so the single real output feature sits in lane 8;
    # all other lanes are exactly zero after relu.
    h2 = jnp.dot(x2, w4_ref[...], preferred_element_type=jnp.float32)
    h2 = jnp.maximum(h2 + b4_ref[...], 0.0)

    # ----- fc5 over concat([h, h2]) folded into ONE matmul:
    # comb lanes 0..7 = fc3 output, lane 8 = fc4 output, lanes 9..127 = 0,
    # matching W5 rows 0..8 (rows 9..127 are zero padding).
    comb = h + h2
    out = jnp.dot(comb.astype(jnp.bfloat16), w5_ref[...],
                  preferred_element_type=jnp.float32)
    o_ref[...] = (out + b5_ref[...]).astype(o_ref.dtype)


# ----------------------------------------------------------------------------
# Parameter handling
# ----------------------------------------------------------------------------
def init_params(key, dim_in_1, dim_in_2):
    """Logical params, nn.Linear-style init (uniform +/- 1/sqrt(fan_in)).

    Weights stored pre-transposed as (in, out); biases as (out,)."""
    ks = jax.random.split(key, 10)

    def linear(kw, kb, fan_in, fan_out):
        bound = 1.0 / float(fan_in) ** 0.5
        w = jax.random.uniform(kw, (fan_in, fan_out), jnp.float32,
                               minval=-bound, maxval=bound)
        b = jax.random.uniform(kb, (fan_out,), jnp.float32,
                               minval=-bound, maxval=bound)
        return w, b

    return (linear(ks[0], ks[1], dim_in_1, 256),   # fc1
            linear(ks[2], ks[3], 256, 64),         # fc2
            linear(ks[4], ks[5], 64, 8),           # fc3
            linear(ks[6], ks[7], dim_in_2, 1),     # fc4
            linear(ks[8], ks[9], 9, 2))            # fc5


def prepare_params(params):
    """Pack logical params into lane-dense, bf16 kernel operands (done once)."""
    (w1, b1), (w2, b2), (w3, b3), (w4, b4), (w5, b5) = params

    def pad2d(a, rows, cols):
        return jnp.pad(a, ((0, rows - a.shape[0]), (0, cols - a.shape[1])))

    W1 = w1.astype(jnp.bfloat16)                                   # (D1, 256)
    B1 = b1.reshape(1, -1).astype(jnp.float32)                     # (1, 256)
    W2 = pad2d(w2, 256, LANES).astype(jnp.bfloat16)                # (256, 128)
    B2 = pad2d(b2.reshape(1, -1), 1, LANES).astype(jnp.float32)    # (1, 128)
    W3 = pad2d(w3, LANES, LANES).astype(jnp.bfloat16)              # (128, 128)
    B3 = pad2d(b3.reshape(1, -1), 1, LANES).astype(jnp.float32)    # (1, 128)
    # fc4: place the single real output column in LANE 8 so that the fc5 input
    # is simply h1 + h2 (no roll / concat needed in-kernel).
    W4 = jnp.zeros((w4.shape[0], LANES), jnp.float32)
    W4 = W4.at[:, 8:9].set(w4).astype(jnp.bfloat16)                # (D2, 128)
    B4 = jnp.zeros((1, LANES), jnp.float32).at[0, 8].set(b4[0])    # (1, 128)
    # fc5: rows 0..7 act on fc3 lanes 0..7, row 8 acts on fc4 lane 8.
    W5 = pad2d(w5, LANES, OUT_PAD).astype(jnp.bfloat16)            # (128, 8)
    B5 = pad2d(b5.reshape(1, -1), 1, OUT_PAD).astype(jnp.float32)  # (1, 8)
    return (W1, B1, W2, B2, W3, B3, W4, B4, W5, B5)


# ----------------------------------------------------------------------------
# Forward wrapper
# ----------------------------------------------------------------------------
def _round_up(n, m):
    return ((n + m - 1) // m) * m


def baseline2_mlp_forward(x1, x2, packed, *, dim_in_1, dim_in_2, tm=4096):
    """x1 -> (-1, dim_in_1), x2 -> (-1, dim_in_2). Returns (B, 2) float32."""
    W1, B1, W2, B2, W3, B3, W4, B4, W5, B5 = packed

    x1 = x1.reshape(-1, dim_in_1)
    x2 = x2.reshape(-1, dim_in_2)
    B = x1.shape[0]
    assert x2.shape[0] == B, "x1 and x2 must flatten to the same batch"

    def nbytes(a):
        return a.size * a.dtype.itemsize

    resident = 2 * sum(nbytes(p) for p in packed)

    # --- batch tile sizing -------------------------------------------------
    # Multiple of 256 (v6e/v7x MXU height; also a 128-multiple for v5e).
    B256 = _round_up(max(B, 1), 256)
    TM = _round_up(min(tm, B256), 256)
    # Keep >= 2 grid tiles when the batch allows it, so the "parallel" grid
    # axis can shard across v7x's two TensorCores.
    if B256 >= 2 * 256:
        TM = min(TM, _round_up(B256 // 2, 256))

    # Conservative per-tile VMEM estimate: double-buffered streamed IO tiles
    # + worst-case in-kernel f32/bf16 intermediates + resident weights.
    def vmem_estimate(tm_):
        io = 2 * tm_ * (dim_in_1 * 4 + dim_in_2 * 4 + LANES * 4)
        interm = tm_ * (256 * 4 + 256 * 2            # fc1 act (f32 + bf16)
                        + 3 * (LANES * 4 + LANES * 2)  # fc2/fc3/fc4 acts
                        + LANES * 4)                   # comb
        return io + interm + resident

    VMEM_BUDGET = 48 << 20   # leaves headroom under v7x's 64 MiB physical VMEM
    while TM > 256 and vmem_estimate(TM) > VMEM_BUDGET:
        TM = max(256, _round_up(TM // 2, 256))

    num_tiles = pl.cdiv(B, TM)
    B_pad = num_tiles * TM

    # Only pad the ragged batch tail (keep native f32; no wrapper-side bf16
    # cast pass -> no extra HBM round trip).
    if B_pad != B:
        x1 = jnp.pad(x1, ((0, B_pad - B), (0, 0)))
        x2 = jnp.pad(x2, ((0, B_pad - B), (0, 0)))

    vmem_limit = max(min(vmem_estimate(TM) + (8 << 20), 56 << 20), 16 << 20)

    flops = 2 * B_pad * (dim_in_1 * 256 + 256 * LANES + LANES * LANES
                         + dim_in_2 * LANES + LANES * OUT_PAD)
    bytes_accessed = (nbytes(x1) + nbytes(x2) + B_pad * OUT_PAD * 4
                      + sum(nbytes(p) for p in packed))
    cost = pl.CostEstimate(flops=flops, transcendentals=0,
                           bytes_accessed=bytes_accessed)

    # Weights/biases: constant block index -> stay VMEM-resident across steps.
    resident_spec = lambda p: pl.BlockSpec(p.shape, lambda i: (0, 0))

    out = pl.pallas_call(
        baseline2_mlp_kernel,
        out_shape=jax.ShapeDtypeStruct((B_pad, OUT_PAD), jnp.float32),
        grid=(num_tiles,),
        in_specs=[
            pl.BlockSpec((TM, dim_in_1), lambda i: (i, 0)),   # x1 tile (f32)
            pl.BlockSpec((TM, dim_in_2), lambda i: (i, 0)),   # x2 tile (f32)
        ] + [resident_spec(p) for p in packed],
        out_specs=pl.BlockSpec((TM, OUT_PAD), lambda i: (i, 0)),
        compiler_params=pltpu.CompilerParams(
            dimension_semantics=("parallel",),   # sharded across TCs on v7x
            vmem_limit_bytes=vmem_limit),
        cost_estimate=cost,
    )(x1, x2, *packed)

    # Real result is the first 2 columns of the (B_pad, 8) output.
    return out[:B, :2]


# ----------------------------------------------------------------------------
if __name__ == "__main__":
    key = jax.random.PRNGKey(0)
    k_x1, k_x2, k_p = jax.random.split(key, 3)

    dim_in_1 = 128
    dim_in_2 = 16
    # x1/x2 have leading dims that the forward flattens via .view(-1, dim_in).
    x1 = jax.random.normal(k_x1, (2, 4, dim_in_1), jnp.float32)
    x2 = jax.random.normal(k_x2, (2, 4, dim_in_2), jnp.float32)

    params = init_params(k_p, dim_in_1, dim_in_2)
    packed = prepare_params(params)

    out = baseline2_mlp_forward(x1, x2, packed,
                                dim_in_1=dim_in_1, dim_in_2=dim_in_2)
    out = jax.block_until_ready(out)

    # Reference in plain f32 JAX (dropout is identity in eval mode).
    (w1, b1), (w2, b2), (w3, b3), (w4, b4), (w5, b5) = params
    x1f = x1.reshape(-1, dim_in_1)
    x2f = x2.reshape(-1, dim_in_2)
    h1 = jnp.maximum(x1f @ w1 + b1, 0.0)
    h1 = jnp.maximum(h1 @ w2 + b2, 0.0)
    h1 = jnp.maximum(h1 @ w3 + b3, 0.0)
    h2 = jnp.maximum(x2f @ w4 + b4, 0.0)
    ref = jnp.concatenate([h1, h2], axis=1) @ w5 + b5

    B = x1f.shape[0]
    assert out.shape == (B, 2), out.shape
    # bf16 activations/weights with f32 accumulation -> loose tolerance vs f32.
    assert jnp.allclose(out, ref, atol=5e-2, rtol=5e-2), (
        float(jnp.max(jnp.abs(out - ref))))

    print("KERNEL_OK")
</pallas_src>

<mosaic_0001>
module attributes {stable_mosaic.version = 11 : i64} {
  func.func @baseline2_mlp_kernel(%arg0: i32, %arg1: memref<256x128xf32, #tpu.memory_space<vmem>>, %arg2: memref<256x16xf32, #tpu.memory_space<vmem>>, %arg3: memref<128x256xbf16, #tpu.memory_space<vmem>>, %arg4: memref<1x256xf32, #tpu.memory_space<vmem>>, %arg5: memref<256x128xbf16, #tpu.memory_space<vmem>>, %arg6: memref<1x128xf32, #tpu.memory_space<vmem>>, %arg7: memref<128x128xbf16, #tpu.memory_space<vmem>>, %arg8: memref<1x128xf32, #tpu.memory_space<vmem>>, %arg9: memref<16x128xbf16, #tpu.memory_space<vmem>>, %arg10: memref<1x128xf32, #tpu.memory_space<vmem>>, %arg11: memref<128x8xbf16, #tpu.memory_space<vmem>>, %arg12: memref<1x8xf32, #tpu.memory_space<vmem>>, %arg13: memref<256x8xf32, #tpu.memory_space<vmem>>) attributes {dimension_semantics = [#tpu.dimension_semantics<parallel>], iteration_bounds = array<i64: 1>, scalar_prefetch = 0 : i64, scratch_operands = 0 : i64, tpu.core_type = #tpu.core_type<tc>, window_params = [{transform_indices = @transform_0, window_bounds = array<i64: 256, 128>}, {transform_indices = @transform_1, window_bounds = array<i64: 256, 16>}, {pipeline_mode = #tpu.pipeline_mode<synchronous>, transform_indices = @transform_2, window_bounds = array<i64: 128, 256>}, {pipeline_mode = #tpu.pipeline_mode<synchronous>, transform_indices = @transform_3, window_bounds = array<i64: 1, 256>}, {pipeline_mode = #tpu.pipeline_mode<synchronous>, transform_indices = @transform_4, window_bounds = array<i64: 256, 128>}, {pipeline_mode = #tpu.pipeline_mode<synchronous>, transform_indices = @transform_5, window_bounds = array<i64: 1, 128>}, {pipeline_mode = #tpu.pipeline_mode<synchronous>, transform_indices = @transform_6, window_bounds = array<i64: 128, 128>}, {pipeline_mode = #tpu.pipeline_mode<synchronous>, transform_indices = @transform_7, window_bounds = array<i64: 1, 128>}, {pipeline_mode = #tpu.pipeline_mode<synchronous>, transform_indices = @transform_8, window_bounds = array<i64: 16, 128>}, {pipeline_mode = #tpu.pipeline_mode<synchronous>, transform_indices = @transform_9, window_bounds = array<i64: 1, 128>}, {pipeline_mode = #tpu.pipeline_mode<synchronous>, transform_indices = @transform_10, window_bounds = array<i64: 128, 8>}, {pipeline_mode = #tpu.pipeline_mode<synchronous>, transform_indices = @transform_11, window_bounds = array<i64: 1, 8>}, {transform_indices = @transform_12, window_bounds = array<i64: 256, 8>}]} {
    %c0 = arith.constant 0 : index
    %c0_0 = arith.constant 0 : index
    %0 = vector.load %arg1[%c0, %c0_0] : memref<256x128xf32, #tpu.memory_space<vmem>>, vector<256x128xf32>
    %1 = arith.truncf %0 : vector<256x128xf32> to vector<256x128xbf16>
    %c0_1 = arith.constant 0 : index
    %c0_2 = arith.constant 0 : index
    %2 = vector.load %arg2[%c0_1, %c0_2] : memref<256x16xf32, #tpu.memory_space<vmem>>, vector<256x16xf32>
    %3 = arith.truncf %2 : vector<256x16xf32> to vector<256x16xbf16>
    %c0_3 = arith.constant 0 : index
    %c0_4 = arith.constant 0 : index
    %4 = vector.load %arg3[%c0_3, %c0_4] : memref<128x256xbf16, #tpu.memory_space<vmem>>, vector<128x256xbf16>
    %cst = arith.constant dense<0.000000e+00> : vector<256x256xf32>
    %5 = tpu.matmul %1, %4, %cst {dimension_numbers = #tpu.dot_dimension_numbers<[1], [0], [0], [1], [0, 0, 1, 1], [], []>} : vector<256x128xbf16>, vector<128x256xbf16>, vector<256x256xf32> -> vector<256x256xf32>
    %c0_5 = arith.constant 0 : index
    %c0_6 = arith.constant 0 : index
    %6 = vector.load %arg4[%c0_5, %c0_6] : memref<1x256xf32, #tpu.memory_space<vmem>>, vector<1x256xf32>
    %7 = vector.broadcast %6 : vector<1x256xf32> to vector<256x256xf32>
    %8 = arith.addf %5, %7 : vector<256x256xf32>
    %cst_7 = arith.constant 0.000000e+00 : f32
    %9 = vector.broadcast %cst_7 : f32 to vector<256x256xf32>
    %10 = arith.maximumf %8, %9 : vector<256x256xf32>
    %11 = arith.truncf %10 : vector<256x256xf32> to vector<256x256xbf16>
    %c0_8 = arith.constant 0 : index
    %c0_9 = arith.constant 0 : index
    %12 = vector.load %arg5[%c0_8, %c0_9] : memref<256x128xbf16, #tpu.memory_space<vmem>>, vector<256x128xbf16>
    %cst_10 = arith.constant dense<0.000000e+00> : vector<256x128xf32>
    %13 = tpu.matmul %11, %12, %cst_10 {dimension_numbers = #tpu.dot_dimension_numbers<[1], [0], [0], [1], [0, 0, 1, 1], [], []>} : vector<256x256xbf16>, vector<256x128xbf16>, vector<256x128xf32> -> vector<256x128xf32>
    %c0_11 = arith.constant 0 : index
    %c0_12 = arith.constant 0 : index
    %14 = vector.load %arg6[%c0_11, %c0_12] : memref<1x128xf32, #tpu.memory_space<vmem>>, vector<1x128xf32>
    %15 = vector.broadcast %14 : vector<1x128xf32> to vector<256x128xf32>
    %16 = arith.addf %13, %15 : vector<256x128xf32>
    %cst_13 = arith.constant 0.000000e+00 : f32
    %17 = vector.broadcast %cst_13 : f32 to vector<256x128xf32>
    %18 = arith.maximumf %16, %17 : vector<256x128xf32>
    %19 = arith.truncf %18 : vector<256x128xf32> to vector<256x128xbf16>
    %c0_14 = arith.constant 0 : index
    %c0_15 = arith.constant 0 : index
    %20 = vector.load %arg7[%c0_14, %c0_15] : memref<128x128xbf16, #tpu.memory_space<vmem>>, vector<128x128xbf16>
    %cst_16 = arith.constant dense<0.000000e+00> : vector<256x128xf32>
    %21 = tpu.matmul %19, %20, %cst_16 {dimension_numbers = #tpu.dot_dimension_numbers<[1], [0], [0], [1], [0, 0, 1, 1], [], []>} : vector<256x128xbf16>, vector<128x128xbf16>, vector<256x128xf32> -> vector<256x128xf32>
    %c0_17 = arith.constant 0 : index
    %c0_18 = arith.constant 0 : index
    %22 = vector.load %arg8[%c0_17, %c0_18] : memref<1x128xf32, #tpu.memory_space<vmem>>, vector<1x128xf32>
    %23 = vector.broadcast %22 : vector<1x128xf32> to vector<256x128xf32>
    %24 = arith.addf %21, %23 : vector<256x128xf32>
    %cst_19 = arith.constant 0.000000e+00 : f32
    %25 = vector.broadcast %cst_19 : f32 to vector<256x128xf32>
    %26 = arith.maximumf %24, %25 : vector<256x128xf32>
    %c0_20 = arith.constant 0 : index
    %c0_21 = arith.constant 0 : index
    %27 = vector.load %arg9[%c0_20, %c0_21] : memref<16x128xbf16, #tpu.memory_space<vmem>>, vector<16x128xbf16>
    %cst_22 = arith.constant dense<0.000000e+00> : vector<256x128xf32>
    %28 = tpu.matmul %3, %27, %cst_22 {dimension_numbers = #tpu.dot_dimension_numbers<[1], [0], [0], [1], [0, 0, 1, 1], [], []>} : vector<256x16xbf16>, vector<16x128xbf16>, vector<256x128xf32> -> vector<256x128xf32>
    %c0_23 = arith.constant 0 : index
    %c0_24 = arith.constant 0 : index
    %29 = vector.load %arg10[%c0_23, %c0_24] : memref<1x128xf32, #tpu.memory_space<vmem>>, vector<1x128xf32>
    %30 = vector.broadcast %29 : vector<1x128xf32> to vector<256x128xf32>
    %31 = arith.addf %28, %30 : vector<256x128xf32>
    %cst_25 = arith.constant 0.000000e+00 : f32
    %32 = vector.broadcast %cst_25 : f32 to vector<256x128xf32>
    %33 = arith.maximumf %31, %32 : vector<256x128xf32>
    %34 = arith.addf %26, %33 : vector<256x128xf32>
    %35 = arith.truncf %34 : vector<256x128xf32> to vector<256x128xbf16>
    %c0_26 = arith.constant 0 : index
    %c0_27 = arith.constant 0 : index
    %36 = vector.load %arg11[%c0_26, %c0_27] : memref<128x8xbf16, #tpu.memory_space<vmem>>, vector<128x8xbf16>
    %cst_28 = arith.constant dense<0.000000e+00> : vector<256x8xf32>
    %37 = tpu.matmul %35, %36, %cst_28 {dimension_numbers = #tpu.dot_dimension_numbers<[1], [0], [0], [1], [0, 0, 1, 1], [], []>} : vector<256x128xbf16>, vector<128x8xbf16>, vector<256x8xf32> -> vector<256x8xf32>
    %c0_29 = arith.constant 0 : index
    %c0_30 = arith.constant 0 : index
    %38 = vector.load %arg12[%c0_29, %c0_30] : memref<1x8xf32, #tpu.memory_space<vmem>>, vector<1x8xf32>
    %39 = vector.broadcast %38 : vector<1x8xf32> to vector<256x8xf32>
    %40 = arith.addf %37, %39 : vector<256x8xf32>
    %c0_31 = arith.constant 0 : index
    %c0_32 = arith.constant 0 : index
    %41 = vector.load %arg13[%c0_31, %c0_32] : memref<256x8xf32, #tpu.memory_space<vmem>>, vector<256x8xf32>
    tpu.vector_store %arg13[%c0_31, %c0_32], %40 {strides = array<i32>} : memref<256x8xf32, #tpu.memory_space<vmem>>, vector<256x8xf32>,
    return
  }
  func.func @transform_0(%arg0: i32) -> (i32, i32) {
    %c0_i32 = arith.constant 0 : i32
    %c0_i32_0 = arith.constant 0 : i32
    return %arg0, %c0_i32 : i32, i32
  }
  func.func @transform_1(%arg0: i32) -> (i32, i32) {
    %c0_i32 = arith.constant 0 : i32
    %c0_i32_0 = arith.constant 0 : i32
    return %arg0, %c0_i32 : i32, i32
  }
  func.func @transform_2(%arg0: i32) -> (i32, i32) {
    %c0_i32 = arith.constant 0 : i32
    %c0_i32_0 = arith.constant 0 : i32
    %c0_i32_1 = arith.constant 0 : i32
    return %c0_i32, %c0_i32_0 : i32, i32
  }
  func.func @transform_3(%arg0: i32) -> (i32, i32) {
    %c0_i32 = arith.constant 0 : i32
    %c0_i32_0 = arith.constant 0 : i32
    %c0_i32_1 = arith.constant 0 : i32
    return %c0_i32, %c0_i32_0 : i32, i32
  }
  func.func @transform_4(%arg0: i32) -> (i32, i32) {
    %c0_i32 = arith.constant 0 : i32
    %c0_i32_0 = arith.constant 0 : i32
    %c0_i32_1 = arith.constant 0 : i32
    return %c0_i32, %c0_i32_0 : i32, i32
  }
  func.func @transform_5(%arg0: i32) -> (i32, i32) {
    %c0_i32 = arith.constant 0 : i32
    %c0_i32_0 = arith.constant 0 : i32
    %c0_i32_1 = arith.constant 0 : i32
    return %c0_i32, %c0_i32_0 : i32, i32
  }
  func.func @transform_6(%arg0: i32) -> (i32, i32) {
    %c0_i32 = arith.constant 0 : i32
    %c0_i32_0 = arith.constant 0 : i32
    %c0_i32_1 = arith.constant 0 : i32
    return %c0_i32, %c0_i32_0 : i32, i32
  }
  func.func @transform_7(%arg0: i32) -> (i32, i32) {
    %c0_i32 = arith.constant 0 : i32
    %c0_i32_0 = arith.constant 0 : i32
    %c0_i32_1 = arith.constant 0 : i32
    return %c0_i32, %c0_i32_0 : i32, i32
  }
  func.func @transform_8(%arg0: i32) -> (i32, i32) {
    %c0_i32 = arith.constant 0 : i32
    %c0_i32_0 = arith.constant 0 : i32
    %c0_i32_1 = arith.constant 0 : i32
    return %c0_i32, %c0_i32_0 : i32, i32
  }
  func.func @transform_9(%arg0: i32) -> (i32, i32) {
    %c0_i32 = arith.constant 0 : i32
    %c0_i32_0 = arith.constant 0 : i32
    %c0_i32_1 = arith.constant 0 : i32
    return %c0_i32, %c0_i32_0 : i32, i32
  }
  func.func @transform_10(%arg0: i32) -> (i32, i32) {
    %c0_i32 = arith.constant 0 : i32
    %c0_i32_0 = arith.constant 0 : i32
    %c0_i32_1 = arith.constant 0 : i32
    return %c0_i32, %c0_i32_0 : i32, i32
  }
  func.func @transform_11(%arg0: i32) -> (i32, i32) {
    %c0_i32 = arith.constant 0 : i32
    %c0_i32_0 = arith.constant 0 : i32
    %c0_i32_1 = arith.constant 0 : i32
    return %c0_i32, %c0_i32_0 : i32, i32
  }
  func.func @transform_12(%arg0: i32) -> (i32, i32) {
    %c0_i32 = arith.constant 0 : i32
    %c0_i32_0 = arith.constant 0 : i32
    return %arg0, %c0_i32 : i32, i32
  }
}

</mosaic_0001>

<bundles_post_ra>
// kernel: tpu_custom_call.1
= control target key start
LH: loop header
LB: loop body
LE: loop exit
PB: predicated region body
PF: predicated region fallthrough
CT: control target
= control target key end

     0   :  { %17 = vsyncpa [#allocation3], 0  ;;  %s3065_s0 = inlined_call_operand.vmem [shape: f32[256,128], index: 0, kind: input, shape index: {}]   ;;  %s3066_s1 = inlined_call_operand.vmem [shape: f32[256,16], index: 1, kind: input, shape index: {}]   ;;  %s3067_s2 = inlined_call_operand.hbm [shape: bf16[128,256], index: 2, kind: input, shape index: {}]   ;;  %s3068_s3 = inlined_call_operand.vmem [shape: f32[1,256], index: 3, kind: input, shape index: {}]   ;;  %s3069_s4 = inlined_call_operand.hbm [shape: bf16[256,128], index: 4, kind: input, shape index: {}]   ;;  %s3070_s5 = inlined_call_operand.vmem [shape: f32[1,128], index: 5, kind: input, shape index: {}]   ;;  %s3071_s6 = inlined_call_operand.vmem [shape: bf16[128,128], index: 6, kind: input, shape index: {}]   ;;  %s3072_s7 = inlined_call_operand.vmem [shape: f32[1,128], index: 7, kind: input, shape index: {}]   ;;  %s3073_s8 = inlined_call_operand.vmem [shape: bf16[16,128], index: 8, kind: input, shape index: {}]   ;;  %s3074_s9 = inlined_call_operand.vmem [shape: f32[1,128], index: 9, kind: input, shape index: {}]   ;;  %s3075_s10 = inlined_call_operand.vmem [shape: bf16[128,8], index: 10, kind: input, shape index: {}]   ;;  %s3076_s11 = inlined_call_operand.vmem [shape: f32[1,8], index: 11, kind: input, shape index: {}]   ;;  %s3077_s12 = inlined_call_operand.vmem [shape: f32[256,8], index: 12, kind: output, shape index: {}]  }
   0x1   :  { %18 = vsyncpa [#allocation5], 0  ;;  %s2251_s21 = smov [#allocation2]   ;;  %s2203_s25 = scalar_lea.hbm %s3067_s2, 2048 }
   0x2   :  { %s28_s22 = sshll.u32 %s2251_s21, 4  ;;  %p2204_p0 = scmp.ne.s32.totalorder %s3067_s2, %s2203_s25  ;;  %s29_s22 = int_to_ptr.vmem [resolvable:$true] %s28_s22 }
   0x3   :  { %p2207_p1 = scmp.lt.u32.totalorder %s2203_s25, %s3067_s2 }
   0x5   :  { %p2209_p2 = pnand %p2207_p1, %p2204_p0 }
   0x7   :  { %2212 = shalt.err (!%p2209_p2)
}
   0x8   :  { %s2213_s30 = scalar_lea.vmem %s29_s22, 2048  ;;  %p2218_p4 = scmp.lt.s32.totalorder %s29_s22, %s29_s22 }
   0x9   :  { %p2214_p3 = scmp.ne.s32.totalorder %s29_s22, %s2213_s30  ;;  %p2219_p5 = scmp.lt.s32.totalorder %s2213_s30, %s2213_s30 }
   0xb   :  { %p2220_p6 = por %p2219_p5, %p2218_p4 }
   0xd   :  { %p2221_p7 = pnand %p2220_p6, %p2214_p3 }
   0xf   :  { %2224 = shalt.err (!%p2221_p7)
}
  0x10   :  { %s2252_s13 = smov 128   ;;  %s2253_s14 = smov 8  }
  0x11   :  { %34 = dma.hbm_to_vmem [thread:$0]  %s3067_s2, 2048, %s29_s22, [#allocation3], %s2252_s13, %s2252_s13, %s2253_s14  }
  0x12   :  { %s2254_s17 = smov [#allocation4]   ;;  %s2225_s21 = scalar_lea.hbm %s3069_s4, 2048 }
  0x13   :  { %s42_s18 = sshll.u32 %s2254_s17, 4  ;;  %p2226_p8 = scmp.ne.s32.totalorder %s3069_s4, %s2225_s21  ;;  %s43_s18 = int_to_ptr.vmem [resolvable:$true] %s42_s18 }
  0x14   :  { %p2229_p9 = scmp.lt.u32.totalorder %s2225_s21, %s3069_s4 }
  0x16   :  { %p2231_p10 = pnand %p2229_p9, %p2226_p8 }
  0x18   :  { %2234 = shalt.err (!%p2231_p10)
}
  0x19   :  { %s2235_s27 = scalar_lea.vmem %s43_s18, 2048  ;;  %p2240_p12 = scmp.lt.s32.totalorder %s43_s18, %s43_s18 }
  0x1a   :  { %p2236_p11 = scmp.ne.s32.totalorder %s43_s18, %s2235_s27  ;;  %p2241_p13 = scmp.lt.s32.totalorder %s2235_s27, %s2235_s27 }
  0x1c   :  { %p2242_p0 = por %p2241_p13, %p2240_p12 }
  0x1e   :  { %p2243_p1 = pnand %p2242_p0, %p2236_p11 }
  0x20   :  { %2246 = shalt.err (!%p2243_p1)
}
  0x21   :  { %s2255_s2 = smov 64   ;;  %s2256_s22 = smov 4  }
  0x22   :  { %48 = dma.hbm_to_vmem [thread:$0]  %s3069_s4, 2048, %s43_s18, [#allocation5], %s2255_s2, %s2255_s2, %s2256_s22  }
  0x23   :  { %2247 = dma.done.wait [#allocation3], 2048  }
  0x24   :  { %2248 = vsyncadd [#allocation3], 4294965248 }
  0x25   :  { %2249 = dma.done.wait [#allocation5], 2048  }
  0x26   :  { %2250 = vsyncadd [#allocation5], 4294965248  ;;  %v2257_v0 = vmov 0   ;;  %v2146_v1 = vld [vmem:[#allocation2 + $0x4] ss:$8 sps:$4 sm:$0xff]   ;;  %v72_v25 = vld [vmem:[%s3065_s0 + $0x10] sm:$0xff] }
  0x27   :  { %306 = vmatprep.mubr.bf16.mxu0 %v2257_v0  ;;  %426 = vmatprep.mubr.bf16.mxu1 %v2257_v0  ;;  %v2148_v2 = vld [vmem:[#allocation2] ss:$8 sps:$4 sm:$0xff]   ;;  %v2149_v3 = vld [vmem:[#allocation2 + $0x14] ss:$8 sps:$4 sm:$0xff]   ;;  %v2151_v4 = vld [vmem:[#allocation2 + $0x10] ss:$8 sps:$4 sm:$0xff]  }
  0x28   :  { %274 = vmatprep.subr.bf16.mxu0 %v2146_v1  ;;  %2123 = vmatprep.subr.bf16.mxu1 %v2146_v1  ;;  %v2152_v5 = vld [vmem:[#allocation2 + $0x24] ss:$8 sps:$4 sm:$0xff]   ;;  %v2154_v6 = vld [vmem:[#allocation2 + $0x20] ss:$8 sps:$4 sm:$0xff]   ;;  %v2155_v7 = vld [vmem:[#allocation2 + $0x34] ss:$8 sps:$4 sm:$0xff]  }
  0x29   :  { %275 = vmatpush1.bf16.msra.mxu0 %v2148_v2  ;;  %2131 = vmatpush1.bf16.msra.mxu1 %v2148_v2  ;;  %v2157_v8 = vld [vmem:[#allocation2 + $0x30] ss:$8 sps:$4 sm:$0xff]   ;;  %v2158_v9 = vld [vmem:[#allocation2 + $0x44] ss:$8 sps:$4 sm:$0xff]   ;;  %v2160_v10 = vld [vmem:[#allocation2 + $0x40] ss:$8 sps:$4 sm:$0xff]  }
  0x2a   :  { %276 = vmatprep.subr.bf16.mxu0 %v2149_v3  ;;  %2124 = vmatprep.subr.bf16.mxu1 %v2149_v3  ;;  %v2161_v11 = vld [vmem:[#allocation2 + $0x54] ss:$8 sps:$4 sm:$0xff]   ;;  %v2163_v12 = vld [vmem:[#allocation2 + $0x50] ss:$8 sps:$4 sm:$0xff]   ;;  %v2164_v13 = vld [vmem:[#allocation2 + $0x64] ss:$8 sps:$4 sm:$0xff]  }
  0x2b   :  { %v2166_v14 = vld [vmem:[#allocation2 + $0x60] ss:$8 sps:$4 sm:$0xff]   ;;  %v2167_v15 = vld [vmem:[#allocation2 + $0x74] ss:$8 sps:$4 sm:$0xff]   ;;  %v2169_v16 = vld [vmem:[#allocation2 + $0x70] ss:$8 sps:$4 sm:$0xff]  }
  0x2c   :  { %v70_v17 = vld [vmem:[%s3065_s0] sm:$0xff]  ;;  %v71_v18 = vld [vmem:[%s3065_s0 + $0x8] sm:$0xff]  ;;  %v73_v26 = vld [vmem:[%s3065_s0 + $0x18] sm:$0xff]  ;;  %vm1186_vm0 = vcmask 130048   ;;  %vm1708_vm1 = vcmask 64512  }
  0x2d   :  { %277 = vmatpush1.bf16.msra.mxu0 %v2151_v4  ;;  %2132 = vmatpush1.bf16.msra.mxu1 %v2151_v4  ;;  %v94_v19 = vld [vmem:[%s3065_s0 + $0xc0] sm:$0xff]  ;;  %v95_v20 = vld [vmem:[%s3065_s0 + $0xc8] sm:$0xff]  ;;  %v102_v22 = vpack.c.bf16 %v71_v18, %v70_v17  ;;  %v96_v27 = vld [vmem:[%s3065_s0 + $0xd0] sm:$0xff]  ;;  %v103_v32 = vpack.c.bf16 %v73_v26, %v72_v25  ;;  %v184_v18 = vlaneseq }
  0x2e   :  { %278 = vmatprep.subr.bf16.mxu0 %v2152_v5  ;;  %2125 = vmatprep.subr.bf16.mxu1 %v2152_v5  ;;  %v2170_v21 = vld [vmem:[#allocation4 + $0x40] sm:$0xff]   ;;  %v114_v23 = vpack.c.bf16 %v95_v20, %v94_v19  ;;  %v97_v28 = vld [vmem:[%s3065_s0 + $0xd8] sm:$0xff]  ;;  %v2172_v29 = vld [vmem:[#allocation4 + $0x48] sm:$0xff]  }
  0x2f   :  { %v2171_v24 = vld [vmem:[#allocation4] sm:$0xff]   ;;  %v2173_v30 = vld [vmem:[#allocation4 + $0x8] sm:$0xff]   ;;  %v2174_v31 = vld [vmem:[#allocation4 + $0x50] sm:$0xff]   ;;  %v115_v33 = vpack.c.bf16 %v97_v28, %v96_v27 }
  0x30   :  { %v2175_v34 = vld [vmem:[#allocation4 + $0x10] sm:$0xff]   ;;  %v2176_v35 = vld [vmem:[#allocation4 + $0x58] sm:$0xff]   ;;  %v74_v36 = vld [vmem:[%s3065_s0 + $0x20] sm:$0xff] }
  0x31   :  { %279 = vmatpush1.bf16.msra.mxu0 %v2154_v6  ;;  %2133 = vmatpush1.bf16.msra.mxu1 %v2154_v6  ;;  %v75_v37 = vld [vmem:[%s3065_s0 + $0x28] sm:$0xff]  ;;  %v98_v38 = vld [vmem:[%s3065_s0 + $0xe0] sm:$0xff]  ;;  %v2177_v40 = vld [vmem:[#allocation4 + $0x18] sm:$0xff]  }
  0x32   :  { %280 = vmatprep.subr.bf16.mxu0 %v2155_v7  ;;  %2126 = vmatprep.subr.bf16.mxu1 %v2155_v7  ;;  %v99_v39 = vld [vmem:[%s3065_s0 + $0xe8] sm:$0xff]  ;;  %v2178_v41 = vld [vmem:[#allocation4 + $0x60] sm:$0xff]   ;;  %v104_v42 = vpack.c.bf16 %v75_v37, %v74_v36  ;;  %v76_v46 = vld [vmem:[%s3065_s0 + $0x30] sm:$0xff] }
  0x33   :  { %v116_v43 = vpack.c.bf16 %v99_v39, %v98_v38  ;;  %v2179_v44 = vld [vmem:[#allocation4 + $0x20] sm:$0xff]   ;;  %v2180_v45 = vld [vmem:[#allocation4 + $0x68] sm:$0xff]   ;;  %v77_v47 = vld [vmem:[%s3065_s0 + $0x38] sm:$0xff] }
  0x34   :  { %v100_v48 = vld [vmem:[%s3065_s0 + $0xf0] sm:$0xff]  ;;  %v101_v49 = vld [vmem:[%s3065_s0 + $0xf8] sm:$0xff]  ;;  %v2181_v50 = vld [vmem:[#allocation4 + $0x28] sm:$0xff]   ;;  %v105_v51 = vpack.c.bf16 %v77_v47, %v76_v46 }
  0x35   :  { %281 = vmatpush1.bf16.msra.mxu0 %v2157_v8  ;;  %2134 = vmatpush1.bf16.msra.mxu1 %v2157_v8  ;;  %v117_v52 = vpack.c.bf16 %v101_v49, %v100_v48  ;;  %v78_v53 = vld [vmem:[%s3065_s0 + $0x40] sm:$0xff]  ;;  %v79_v54 = vld [vmem:[%s3065_s0 + $0x48] sm:$0xff]  ;;  %v80_v56 = vld [vmem:[%s3065_s0 + $0x50] sm:$0xff] }
  0x36   :  { %282 = vmatprep.subr.bf16.mxu0 %v2158_v9  ;;  %2127 = vmatprep.subr.bf16.mxu1 %v2158_v9  ;;  %v106_v55 = vpack.c.bf16 %v79_v54, %v78_v53  ;;  %v81_v57 = vld [vmem:[%s3065_s0 + $0x58] sm:$0xff]  ;;  %v82_v59 = vld [vmem:[%s3065_s0 + $0x60] sm:$0xff]  ;;  %v83_v60 = vld [vmem:[%s3065_s0 + $0x68] sm:$0xff] }
  0x37   :  { %v107_v58 = vpack.c.bf16 %v81_v57, %v80_v56  ;;  %v108_v61 = vpack.c.bf16 %v83_v60, %v82_v59  ;;  %v84_v62 = vld [vmem:[%s3065_s0 + $0x70] sm:$0xff]  ;;  %v85_v63 = vld [vmem:[%s3065_s0 + $0x78] sm:$0xff]  ;;  %v86_v2 = vld [vmem:[%s3065_s0 + $0x80] sm:$0xff] }
  0x38   :  { %v109_v1 = vpack.c.bf16 %v85_v63, %v84_v62  ;;  %v87_v3 = vld [vmem:[%s3065_s0 + $0x88] sm:$0xff]  ;;  %v88_v5 = vld [vmem:[%s3065_s0 + $0x90] sm:$0xff]  ;;  %v89_v6 = vld [vmem:[%s3065_s0 + $0x98] sm:$0xff] }
  0x39   :  { %283 = vmatpush1.bf16.msra.mxu0 %v2160_v10  ;;  %2135 = vmatpush1.bf16.msra.mxu1 %v2160_v10  ;;  %v110_v4 = vpack.c.bf16 %v87_v3, %v86_v2  ;;  %v111_v7 = vpack.c.bf16 %v89_v6, %v88_v5  ;;  %v90_v8 = vld [vmem:[%s3065_s0 + $0xa0] sm:$0xff]  ;;  %v91_v9 = vld [vmem:[%s3065_s0 + $0xa8] sm:$0xff]  ;;  %v2185_v17 = vld [vmem:[#allocation4 + $0x38] sm:$0xff]  }
  0x3a   :  { %284 = vmatprep.subr.bf16.mxu0 %v2161_v11  ;;  %2128 = vmatprep.subr.bf16.mxu1 %v2161_v11  ;;  %v112_v10 = vpack.c.bf16 %v91_v9, %v90_v8  ;;  %v92_v11 = vld [vmem:[%s3065_s0 + $0xb0] sm:$0xff]  ;;  %v182_v20 = vld [vmem:[%s3068_s3] sm:$0x3] }
  0x3b   :  { %v2186_v39 = vld [vmem:[%s3073_s8] sm:$0xff]   ;;  %v2189_v53 = vld [vmem:[%s3071_s6 + $0x10] sm:$0xff]  }
  0x3d   :  { %285 = vmatpush1.bf16.msra.mxu0 %v2163_v12  ;;  %2136 = vmatpush1.bf16.msra.mxu1 %v2163_v12  ;;  %v93_v12 = vld [vmem:[%s3065_s0 + $0xb8] sm:$0xff] }
  0x3e   :  { %286 = vmatprep.subr.bf16.mxu0 %v2164_v13  ;;  %2129 = vmatprep.subr.bf16.mxu1 %v2164_v13  ;;  %v113_v13 = vpack.c.bf16 %v93_v12, %v92_v11 }
  0x41   :  { %287 = vmatpush1.bf16.msra.mxu0 %v2166_v14  ;;  %2137 = vmatpush1.bf16.msra.mxu1 %v2166_v14  ;;  %v2182_v14 = vld [vmem:[#allocation4 + $0x70] sm:$0xff]  }
  0x42   :  { %288 = vmatprep.subr.bf16.mxu0 %v2167_v15  ;;  %2130 = vmatprep.subr.bf16.mxu1 %v2167_v15  ;;  %v2183_v15 = vld [vmem:[#allocation4 + $0x30] sm:$0xff]  }
  0x45   :  { %289 = vmatpush1.bf16.msra.mxu0 %v2169_v16  ;;  %2138 = vmatpush1.bf16.msra.mxu1 %v2169_v16  ;;  %v2184_v16 = vld [vmem:[#allocation4 + $0x78] sm:$0xff]  }
  0x46   :  { %1816 = vmatprep.subr.bf16.mxu1 %v2170_v21 }
  0x48   :  { %307 = vmatmul.mubr.bf16.vlgmr.msra.gmra.mrb[0].mxu0 %v102_v22  ;;  %427 = vmatmul.mubr.bf16.vlgmr.msra.gmra.mrb[0].mxu1 %v114_v23 }
  0x49   :  { %316 = vmatprep.mubr.bf16.mxu0 %v2257_v0  ;;  %436 = vmatprep.mubr.bf16.mxu1 %v2257_v0 }
  0x4a   :  { %1817 = vmatpush3.bf16.msra.mxu1 %v2171_v24 }
  0x4b   :  { %1818 = vmatprep.subr.bf16.mxu1 %v2172_v29 }
  0x4e   :  { %1819 = vmatpush3.bf16.msra.mxu1 %v2173_v30 }
  0x4f   :  { %1820 = vmatprep.subr.bf16.mxu1 %v2174_v31 }
  0x50   :  { %317 = vmatmul.mubr.bf16.gmra.mrb[4].mxu0 %v103_v32  ;;  %437 = vmatmul.mubr.bf16.gmra.mrb[4].mxu1 %v115_v33 }
  0x51   :  { %326 = vmatprep.mubr.bf16.mxu0 %v2257_v0  ;;  %446 = vmatprep.mubr.bf16.mxu1 %v2257_v0 }
  0x52   :  { %1821 = vmatpush3.bf16.msra.mxu1 %v2175_v34 }
  0x53   :  { %1822 = vmatprep.subr.bf16.mxu1 %v2176_v35 }
  0x56   :  { %1823 = vmatpush3.bf16.msra.mxu1 %v2177_v40  ;;  %v2187_v40 = vld [vmem:[%s3071_s6] sm:$0xff]  }
  0x57   :  { %1824 = vmatprep.subr.bf16.mxu1 %v2178_v41  ;;  %1993 = vmatprep.subr.bf16.mxu0 %v2187_v40 }
  0x58   :  { %327 = vmatmul.mubr.bf16.gmra.mrb[8].mxu0 %v104_v42  ;;  %447 = vmatmul.mubr.bf16.gmra.mrb[8].mxu1 %v116_v43 }
  0x59   :  { %336 = vmatprep.mubr.bf16.mxu0 %v2257_v0  ;;  %456 = vmatprep.mubr.bf16.mxu1 %v2257_v0 }
  0x5a   :  { %1825 = vmatpush3.bf16.msra.mxu1 %v2179_v44  ;;  %v2188_v44 = vld [vmem:[%s3071_s6 + $0x8] sm:$0xff]   ;;  %1994 = vmatpush3.bf16.msra.mxu0 %v2187_v40 }
  0x5b   :  { %1826 = vmatprep.subr.bf16.mxu1 %v2180_v45  ;;  %1995 = vmatprep.subr.bf16.mxu0 %v2188_v44 }
  0x5e   :  { %1827 = vmatpush3.bf16.msra.mxu1 %v2181_v50  ;;  %1996 = vmatpush3.bf16.msra.mxu0 %v2188_v44 }
  0x5f   :  { %1828 = vmatprep.subr.bf16.mxu1 %v2182_v14  ;;  %1997 = vmatprep.subr.bf16.mxu0 %v2189_v53 }
  0x60   :  { %337 = vmatmul.mubr.bf16.gmra.mrb[12].mxu0 %v105_v51  ;;  %457 = vmatmul.mubr.bf16.gmra.mrb[12].mxu1 %v117_v52 }
  0x61   :  { %346 = vmatprep.mubr.bf16.mxu0 %v2257_v0 }
  0x62   :  { %1829 = vmatpush3.bf16.msra.mxu1 %v2183_v15  ;;  %1998 = vmatpush3.bf16.msra.mxu0 %v2189_v53 }
  0x63   :  { %1830 = vmatprep.subr.bf16.mxu1 %v2184_v16 }
  0x66   :  { %1831 = vmatpush3.bf16.msra.mxu1 %v2185_v17 }
  0x67   :  { %2041 = vmatprep.subr.bf16.mxu1 %v2186_v39 }
  0x68   :  { %347 = vmatmul.mubr.bf16.gmra.mrb[16].mxu0 %v106_v55 }
  0x69   :  { %356 = vmatprep.mubr.bf16.mxu0 %v2257_v0 }
  0x70   :  { %357 = vmatmul.mubr.bf16.gmra.mrb[20].mxu0 %v107_v58 }
  0x71   :  { %366 = vmatprep.mubr.bf16.mxu0 %v2257_v0 }
  0x78   :  { %367 = vmatmul.mubr.bf16.gmra.mrb[24].mxu0 %v108_v61 }
  0x79   :  { %376 = vmatprep.mubr.bf16.mxu0 %v2257_v0 }
  0x80   :  { %377 = vmatmul.mubr.bf16.gmra.mrb[28].mxu0 %v109_v1 }
  0x81   :  { %386 = vmatprep.mubr.bf16.mxu0 %v2257_v0 }
  0x88   :  { %387 = vmatmul.mubr.bf16.gmra.mrb[32].mxu0 %v110_v4 }
  0x89   :  { %396 = vmatprep.mubr.bf16.mxu0 %v2257_v0 }
  0x90   :  { %397 = vmatmul.mubr.bf16.gmra.mrb[36].mxu0 %v111_v7 }
  0x91   :  { %406 = vmatprep.mubr.bf16.mxu0 %v2257_v0 }
  0x98   :  { %407 = vmatmul.mubr.bf16.gmra.mrb[40].mxu0 %v112_v10 }
  0x99   :  { %416 = vmatprep.mubr.bf16.mxu0 %v2257_v0  ;;  %v185_v0 = vshrl.u32 %v184_v18, 7 }
  0x9b   :  { %v186_v19 = vsub.s32 0, %v185_v0  ;;  %v190_v21 = vsub.s32 1, %v185_v0 }
  0x9d   :  { %v2462_v22 = vrot.slane %v182_v20, %v186_v19  ;;  %v2464_v23 = vrot.slane %v182_v20, %v190_v21 }
  0xa0   :  { %417 = vmatmul.mubr.bf16.gmra.mrb[44].mxu0 %v113_v13 }
 0x11b   :  { %v308_v24 = vpop.f32.mrb[0].mxu0  ;;  %v428_v25 = vpop.f32.mrb[0].mxu1 }
 0x11c   :  { %v309_v26 = vadd.f32 %v308_v24, %v2462_v22  ;;  %v310_v27 = vpop.f32.mrb[1].mxu0  ;;  %v429_v28 = vadd.f32 %v428_v25, %v2462_v22  ;;  %v430_v29 = vpop.f32.mrb[1].mxu1 }
 0x11d   :  { %v311_v30 = vadd.f32 %v310_v27, %v2464_v23  ;;  %v312_v31 = vpop.f32.mrb[2].mxu0  ;;  %v431_v32 = vadd.f32 %v430_v29, %v2464_v23  ;;  %v432_v33 = vpop.f32.mrb[2].mxu1 }
 0x11e   :  { %v313_v34 = vadd.f32 %v312_v31, %v2462_v22  ;;  %v314_v35 = vpop.f32.mrb[3].mxu0  ;;  %v515_v36 = vmax.f32 %v429_v28, 0.0  ;;  %v433_v37 = vadd.f32 %v432_v33, %v2462_v22  ;;  %v434_v38 = vpop.f32.mrb[3].mxu1  ;;  %v467_v45 = vmax.f32 %v309_v26, 0.0 }
 0x11f   :  { %v315_v41 = vadd.f32 %v314_v35, %v2464_v23  ;;  %v516_v42 = vmax.f32 %v431_v32, 0.0  ;;  %v435_v43 = vadd.f32 %v434_v38, %v2464_v23  ;;  %v468_v48 = vmax.f32 %v311_v30, 0.0 }
 0x120   :  { %v469_v46 = vmax.f32 %v313_v34, 0.0  ;;  %v517_v47 = vmax.f32 %v433_v37, 0.0 }
 0x121   :  { %v470_v49 = vmax.f32 %v315_v41, 0.0  ;;  %v518_v50 = vmax.f32 %v435_v43, 0.0 }
 0x122   :  { %v531_v51 = vpack.c.bf16 %v469_v46, %v467_v45  ;;  %v2483_v52 = vpack.c.bf16 %v517_v47, %v515_v36 }
 0x123   :  { %v532_v54 = vpack.c.bf16 %v470_v49, %v468_v48  ;;  %v318_v55 = vpop.f32.mrb[4].mxu0  ;;  %v2488_v56 = vpack.c.bf16 %v518_v50, %v516_v42  ;;  %v438_v57 = vpop.f32.mrb[4].mxu1 }
 0x124   :  { %v319_v58 = vadd.f32 %v318_v55, %v2462_v22  ;;  %v320_v59 = vpop.f32.mrb[5].mxu0  ;;  %v439_v60 = vadd.f32 %v438_v57, %v2462_v22  ;;  %v440_v61 = vpop.f32.mrb[5].mxu1 }
 0x125   :  { %v321_v62 = vadd.f32 %v320_v59, %v2464_v23  ;;  %v322_v63 = vpop.f32.mrb[6].mxu0  ;;  %730 = vmatprep.mubr.bf16.mxu1 %v532_v54  ;;  %v441_v1 = vadd.f32 %v440_v61, %v2464_v23  ;;  %v442_v2 = vpop.f32.mrb[6].mxu1 }
 0x126   :  { %v323_v3 = vadd.f32 %v322_v63, %v2462_v22  ;;  %v324_v4 = vpop.f32.mrb[7].mxu0  ;;  %731 = vmatmul.mubr.bf16.vlgmr.msra.gmra.mrb[16].mxu1 %v531_v51  ;;  %v519_v5 = vmax.f32 %v439_v60, 0.0  ;;  %v443_v6 = vadd.f32 %v442_v2, %v2462_v22  ;;  %v444_v7 = vpop.f32.mrb[7].mxu1  ;;  %v471_v11 = vmax.f32 %v319_v58, 0.0 }
 0x127   :  { %v325_v8 = vadd.f32 %v324_v4, %v2464_v23  ;;  %v520_v9 = vmax.f32 %v441_v1, 0.0  ;;  %v445_v10 = vadd.f32 %v444_v7, %v2464_v23  ;;  %2042 = vmatpush3.bf16.msra.mxu1 %v2186_v39  ;;  %v472_v14 = vmax.f32 %v321_v62, 0.0 }
 0x128   :  { %v473_v12 = vmax.f32 %v323_v3, 0.0  ;;  %v521_v13 = vmax.f32 %v443_v6, 0.0 }
 0x129   :  { %v474_v15 = vmax.f32 %v325_v8, 0.0  ;;  %v522_v16 = vmax.f32 %v445_v10, 0.0 }
 0x12a   :  { %v533_v17 = vpack.c.bf16 %v473_v12, %v471_v11  ;;  %v2498_v18 = vpack.c.bf16 %v521_v13, %v519_v5 }
 0x12b   :  { %v534_v0 = vpack.c.bf16 %v474_v15, %v472_v14  ;;  %v328_v19 = vpop.f32.mrb[8].mxu0  ;;  %v2500_v20 = vpack.c.bf16 %v522_v16, %v520_v9  ;;  %v448_v21 = vpop.f32.mrb[8].mxu1 }
 0x12c   :  { %v329_v24 = vadd.f32 %v328_v19, %v2462_v22  ;;  %v330_v25 = vpop.f32.mrb[9].mxu0  ;;  %v449_v26 = vadd.f32 %v448_v21, %v2462_v22  ;;  %v450_v27 = vpop.f32.mrb[9].mxu1 }
 0x12d   :  { %v331_v28 = vadd.f32 %v330_v25, %v2464_v23  ;;  %v332_v29 = vpop.f32.mrb[10].mxu0  ;;  %738 = vmatprep.mubr.bf16.mxu1 %v534_v0  ;;  %v451_v30 = vadd.f32 %v450_v27, %v2464_v23  ;;  %v452_v31 = vpop.f32.mrb[10].mxu1 }
 0x12e   :  { %v333_v32 = vadd.f32 %v332_v29, %v2462_v22  ;;  %v334_v33 = vpop.f32.mrb[11].mxu0  ;;  %739 = vmatmul.mubr.bf16.gmra.mrb[20].mxu1 %v533_v17  ;;  %v523_v34 = vmax.f32 %v449_v26, 0.0  ;;  %v453_v35 = vadd.f32 %v452_v31, %v2462_v22  ;;  %v454_v36 = vpop.f32.mrb[11].mxu1  ;;  %v475_v40 = vmax.f32 %v329_v24, 0.0 }
 0x12f   :  { %v335_v37 = vadd.f32 %v334_v33, %v2464_v23  ;;  %v524_v38 = vmax.f32 %v451_v30, 0.0  ;;  %v455_v39 = vadd.f32 %v454_v36, %v2464_v23  ;;  %v476_v43 = vmax.f32 %v331_v28, 0.0 }
 0x130   :  { %v477_v41 = vmax.f32 %v333_v32, 0.0  ;;  %v525_v42 = vmax.f32 %v453_v35, 0.0 }
 0x131   :  { %v478_v44 = vmax.f32 %v335_v37, 0.0  ;;  %v526_v45 = vmax.f32 %v455_v39, 0.0 }
 0x132   :  { %v535_v46 = vpack.c.bf16 %v477_v41, %v475_v40  ;;  %v2510_v47 = vpack.c.bf16 %v525_v42, %v523_v34 }
 0x133   :  { %v536_v48 = vpack.c.bf16 %v478_v44, %v476_v43  ;;  %v338_v49 = vpop.f32.mrb[12].mxu0  ;;  %v2512_v50 = vpack.c.bf16 %v526_v45, %v524_v38  ;;  %v458_v51 = vpop.f32.mrb[12].mxu1 }
 0x134   :  { %v339_v53 = vadd.f32 %v338_v49, %v2462_v22  ;;  %v340_v54 = vpop.f32.mrb[13].mxu0  ;;  %v459_v55 = vadd.f32 %v458_v51, %v2462_v22  ;;  %v460_v57 = vpop.f32.mrb[13].mxu1 }
 0x135   :  { %v341_v58 = vadd.f32 %v340_v54, %v2464_v23  ;;  %v342_v59 = vpop.f32.mrb[14].mxu0  ;;  %746 = vmatprep.mubr.bf16.mxu1 %v536_v48  ;;  %v461_v60 = vadd.f32 %v460_v57, %v2464_v23  ;;  %v462_v61 = vpop.f32.mrb[14].mxu1 }
 0x136   :  { %v343_v62 = vadd.f32 %v342_v59, %v2462_v22  ;;  %v344_v63 = vpop.f32.mrb[15].mxu0  ;;  %747 = vmatmul.mubr.bf16.gmra.mrb[24].mxu1 %v535_v46  ;;  %v527_v1 = vmax.f32 %v459_v55, 0.0  ;;  %v463_v2 = vadd.f32 %v462_v61, %v2462_v22  ;;  %v464_v3 = vpop.f32.mrb[15].mxu1  ;;  %v479_v7 = vmax.f32 %v339_v53, 0.0 }
 0x137   :  { %v345_v4 = vadd.f32 %v344_v63, %v2464_v23  ;;  %v528_v5 = vmax.f32 %v461_v60, 0.0  ;;  %v465_v6 = vadd.f32 %v464_v3, %v2464_v23  ;;  %v480_v10 = vmax.f32 %v341_v58, 0.0 }
 0x138   :  { %v481_v8 = vmax.f32 %v343_v62, 0.0  ;;  %v529_v9 = vmax.f32 %v463_v2, 0.0 }
 0x139   :  { %v482_v11 = vmax.f32 %v345_v4, 0.0  ;;  %v530_v12 = vmax.f32 %v465_v6, 0.0 }
 0x13a   :  { %v537_v13 = vpack.c.bf16 %v481_v8, %v479_v7  ;;  %v2522_v14 = vpack.c.bf16 %v529_v9, %v527_v1 }
 0x13b   :  { %v538_v15 = vpack.c.bf16 %v482_v11, %v480_v10  ;;  %v348_v16 = vpop.f32.mrb[16].mxu0  ;;  %v2524_v17 = vpack.c.bf16 %v530_v12, %v528_v5 }
 0x13c   :  { %v349_v0 = vadd.f32 %v348_v16, %v2462_v22  ;;  %v350_v19 = vpop.f32.mrb[17].mxu0 }
 0x13d   :  { %v351_v21 = vadd.f32 %v350_v19, %v2464_v23  ;;  %v352_v24 = vpop.f32.mrb[18].mxu0  ;;  %754 = vmatprep.mubr.bf16.mxu1 %v538_v15 }
 0x13e   :  { %v353_v25 = vadd.f32 %v352_v24, %v2462_v22  ;;  %v354_v26 = vpop.f32.mrb[19].mxu0  ;;  %755 = vmatmul.mubr.bf16.gmra.mrb[28].mxu1 %v537_v13  ;;  %v483_v28 = vmax.f32 %v349_v0, 0.0 }
 0x13f   :  { %v355_v27 = vadd.f32 %v354_v26, %v2464_v23  ;;  %v484_v30 = vmax.f32 %v351_v21, 0.0 }
 0x140   :  { %v485_v29 = vmax.f32 %v353_v25, 0.0 }
 0x141   :  { %v486_v31 = vmax.f32 %v355_v27, 0.0 }
 0x142   :  { %v539_v32 = vpack.c.bf16 %v485_v29, %v483_v28 }
 0x143   :  { %v540_v33 = vpack.c.bf16 %v486_v31, %v484_v30  ;;  %v358_v34 = vpop.f32.mrb[20].mxu0 }
 0x144   :  { %v359_v35 = vadd.f32 %v358_v34, %v2462_v22  ;;  %v360_v36 = vpop.f32.mrb[21].mxu0 }
 0x145   :  { %v361_v37 = vadd.f32 %v360_v36, %v2464_v23  ;;  %v362_v38 = vpop.f32.mrb[22].mxu0  ;;  %762 = vmatprep.mubr.bf16.mxu1 %v540_v33 }
 0x146   :  { %v363_v39 = vadd.f32 %v362_v38, %v2462_v22  ;;  %v364_v40 = vpop.f32.mrb[23].mxu0  ;;  %763 = vmatmul.mubr.bf16.gmra.mrb[32].mxu1 %v539_v32  ;;  %v487_v42 = vmax.f32 %v359_v35, 0.0 }
 0x147   :  { %v365_v41 = vadd.f32 %v364_v40, %v2464_v23  ;;  %v488_v44 = vmax.f32 %v361_v37, 0.0 }
 0x148   :  { %v489_v43 = vmax.f32 %v363_v39, 0.0 }
 0x149   :  { %v490_v45 = vmax.f32 %v365_v41, 0.0 }
 0x14a   :  { %v541_v46 = vpack.c.bf16 %v489_v43, %v487_v42 }
 0x14b   :  { %v542_v48 = vpack.c.bf16 %v490_v45, %v488_v44  ;;  %v368_v49 = vpop.f32.mrb[24].mxu0 }
 0x14c   :  { %v369_v51 = vadd.f32 %v368_v49, %v2462_v22  ;;  %v370_v53 = vpop.f32.mrb[25].mxu0 }
 0x14d   :  { %v371_v54 = vadd.f32 %v370_v53, %v2464_v23  ;;  %v372_v55 = vpop.f32.mrb[26].mxu0  ;;  %770 = vmatprep.mubr.bf16.mxu1 %v542_v48 }
 0x14e   :  { %v373_v57 = vadd.f32 %v372_v55, %v2462_v22  ;;  %v374_v58 = vpop.f32.mrb[27].mxu0  ;;  %771 = vmatmul.mubr.bf16.gmra.mrb[36].mxu1 %v541_v46  ;;  %v491_v60 = vmax.f32 %v369_v51, 0.0 }
 0x14f   :  { %v375_v59 = vadd.f32 %v374_v58, %v2464_v23  ;;  %v492_v62 = vmax.f32 %v371_v54, 0.0 }
 0x150   :  { %v493_v61 = vmax.f32 %v373_v57, 0.0 }
 0x151   :  { %v494_v63 = vmax.f32 %v375_v59, 0.0 }
 0x152   :  { %v543_v1 = vpack.c.bf16 %v493_v61, %v491_v60 }
 0x153   :  { %v544_v2 = vpack.c.bf16 %v494_v63, %v492_v62  ;;  %v378_v3 = vpop.f32.mrb[28].mxu0 }
 0x154   :  { %v379_v4 = vadd.f32 %v378_v3, %v2462_v22  ;;  %v380_v5 = vpop.f32.mrb[29].mxu0 }
 0x155   :  { %v381_v6 = vadd.f32 %v380_v5, %v2464_v23  ;;  %v382_v7 = vpop.f32.mrb[30].mxu0  ;;  %778 = vmatprep.mubr.bf16.mxu1 %v544_v2 }
 0x156   :  { %v383_v8 = vadd.f32 %v382_v7, %v2462_v22  ;;  %v384_v9 = vpop.f32.mrb[31].mxu0  ;;  %779 = vmatmul.mubr.bf16.gmra.mrb[40].mxu1 %v543_v1  ;;  %v495_v11 = vmax.f32 %v379_v4, 0.0 }
 0x157   :  { %v385_v10 = vadd.f32 %v384_v9, %v2464_v23  ;;  %v496_v13 = vmax.f32 %v381_v6, 0.0 }
 0x158   :  { %v497_v12 = vmax.f32 %v383_v8, 0.0 }
 0x159   :  { %v498_v15 = vmax.f32 %v385_v10, 0.0 }
 0x15a   :  { %v545_v16 = vpack.c.bf16 %v497_v12, %v495_v11 }
 0x15b   :  { %v546_v0 = vpack.c.bf16 %v498_v15, %v496_v13  ;;  %v388_v19 = vpop.f32.mrb[32].mxu0  ;;  %v2190_v13 = vld [vmem:[%s3071_s6 + $0x18] sm:$0xff]  }
 0x15c   :  { %v389_v21 = vadd.f32 %v388_v19, %v2462_v22  ;;  %v390_v24 = vpop.f32.mrb[33].mxu0  ;;  %1999 = vmatprep.subr.bf16.mxu0 %v2190_v13 }
 0x15d   :  { %v391_v25 = vadd.f32 %v390_v24, %v2464_v23  ;;  %v392_v26 = vpop.f32.mrb[34].mxu0  ;;  %786 = vmatprep.mubr.bf16.mxu1 %v546_v0  ;;  %2000 = vmatpush3.bf16.msra.mxu0 %v2190_v13 }
 0x15e   :  { %v393_v27 = vadd.f32 %v392_v26, %v2462_v22  ;;  %v394_v28 = vpop.f32.mrb[35].mxu0  ;;  %787 = vmatmul.mubr.bf16.gmra.mrb[44].mxu1 %v545_v16  ;;  %v499_v30 = vmax.f32 %v389_v21, 0.0 }
 0x15f   :  { %v395_v29 = vadd.f32 %v394_v28, %v2464_v23  ;;  %v500_v32 = vmax.f32 %v391_v25, 0.0  ;;  %v2193_v25 = vld [vmem:[%s3071_s6 + $0x30] sm:$0xff]  }
 0x160   :  { %v501_v31 = vmax.f32 %v393_v27, 0.0  ;;  %v124_v28 = vld [vmem:[%s3066_s1 + $0x30] sm:$0xff] }
 0x161   :  { %v502_v33 = vmax.f32 %v395_v29, 0.0  ;;  %v125_v29 = vld [vmem:[%s3066_s1 + $0x38] sm:$0xff] }
 0x162   :  { %v547_v34 = vpack.c.bf16 %v501_v31, %v499_v30  ;;  %v126_v30 = vld [vmem:[%s3066_s1 + $0x40] sm:$0xff]  ;;  %v127_v31 = vld [vmem:[%s3066_s1 + $0x48] sm:$0xff] }
 0x163   :  { %v548_v35 = vpack.c.bf16 %v502_v33, %v500_v32  ;;  %v398_v36 = vpop.f32.mrb[36].mxu0  ;;  %v153_v32 = vpack.c.bf16 %v125_v29, %v124_v28  ;;  %v154_v33 = vpack.c.bf16 %v127_v31, %v126_v30  ;;  %v2196_v31 = vld [vmem:[%s3075_s10 + $0x8] sm:$0xff]  }
 0x164   :  { %v399_v37 = vadd.f32 %v398_v36, %v2462_v22  ;;  %v400_v38 = vpop.f32.mrb[37].mxu0 }
 0x165   :  { %v401_v39 = vadd.f32 %v400_v38, %v2464_v23  ;;  %v402_v40 = vpop.f32.mrb[38].mxu0  ;;  %794 = vmatprep.mubr.bf16.mxu1 %v548_v35  ;;  %v129_v35 = vld [vmem:[%s3066_s1 + $0x58] sm:$0xff]  ;;  %v131_v38 = vld [vmem:[%s3066_s1 + $0x68] sm:$0xff] }
 0x166   :  { %v403_v41 = vadd.f32 %v402_v40, %v2462_v22  ;;  %v404_v42 = vpop.f32.mrb[39].mxu0  ;;  %795 = vmatmul.mubr.bf16.gmra.mrb[48].mxu1 %v547_v34  ;;  %v503_v44 = vmax.f32 %v399_v37, 0.0  ;;  %v128_v34 = vld [vmem:[%s3066_s1 + $0x50] sm:$0xff]  ;;  %v130_v37 = vld [vmem:[%s3066_s1 + $0x60] sm:$0xff] }
 0x167   :  { %v405_v43 = vadd.f32 %v404_v42, %v2464_v23  ;;  %v504_v46 = vmax.f32 %v401_v39, 0.0  ;;  %v155_v36 = vpack.c.bf16 %v129_v35, %v128_v34  ;;  %v156_v39 = vpack.c.bf16 %v131_v38, %v130_v37  ;;  %v132_v40 = vld [vmem:[%s3066_s1 + $0x70] sm:$0xff] }
 0x168   :  { %v505_v45 = vmax.f32 %v403_v41, 0.0  ;;  %v133_v41 = vld [vmem:[%s3066_s1 + $0x78] sm:$0xff] }
 0x169   :  { %v506_v48 = vmax.f32 %v405_v43, 0.0  ;;  %v157_v42 = vpack.c.bf16 %v133_v41, %v132_v40  ;;  %v134_v43 = vld [vmem:[%s3066_s1 + $0x80] sm:$0xff] }
 0x16a   :  { %v549_v49 = vpack.c.bf16 %v505_v45, %v503_v44  ;;  %v135_v44 = vld [vmem:[%s3066_s1 + $0x88] sm:$0xff] }
 0x16b   :  { %v550_v51 = vpack.c.bf16 %v506_v48, %v504_v46  ;;  %v408_v53 = vpop.f32.mrb[40].mxu0  ;;  %v158_v45 = vpack.c.bf16 %v135_v44, %v134_v43  ;;  %v136_v46 = vld [vmem:[%s3066_s1 + $0x90] sm:$0xff]  ;;  %v137_v48 = vld [vmem:[%s3066_s1 + $0x98] sm:$0xff] }
 0x16c   :  { %v409_v54 = vadd.f32 %v408_v53, %v2462_v22  ;;  %v410_v55 = vpop.f32.mrb[41].mxu0  ;;  %v139_v53 = vld [vmem:[%s3066_s1 + $0xa8] sm:$0xff]  ;;  %v2198_v44 = vld [vmem:[%s3075_s10 + $0x18] sm:$0xff]  }
 0x16d   :  { %v411_v57 = vadd.f32 %v410_v55, %v2464_v23  ;;  %v412_v58 = vpop.f32.mrb[42].mxu0  ;;  %802 = vmatprep.mubr.bf16.mxu1 %v550_v51  ;;  %v138_v51 = vld [vmem:[%s3066_s1 + $0xa0] sm:$0xff]  ;;  %v140_v55 = vld [vmem:[%s3066_s1 + $0xb0] sm:$0xff] }
 0x16e   :  { %v413_v59 = vadd.f32 %v412_v58, %v2462_v22  ;;  %v414_v60 = vpop.f32.mrb[43].mxu0  ;;  %803 = vmatmul.mubr.bf16.gmra.mrb[52].mxu1 %v549_v49  ;;  %v507_v62 = vmax.f32 %v409_v54, 0.0  ;;  %v159_v49 = vpack.c.bf16 %v137_v48, %v136_v46  ;;  %v160_v54 = vpack.c.bf16 %v139_v53, %v138_v51  ;;  %v2199_v51 = vld [vmem:[%s3075_s10 + $0x20] sm:$0xff]  }
 0x16f   :  { %v415_v61 = vadd.f32 %v414_v60, %v2464_v23  ;;  %v508_v1 = vmax.f32 %v411_v57, 0.0  ;;  %v141_v57 = vld [vmem:[%s3066_s1 + $0xb8] sm:$0xff]  ;;  %v143_v60 = vld [vmem:[%s3066_s1 + $0xc8] sm:$0xff] }
 0x170   :  { %v509_v63 = vmax.f32 %v413_v59, 0.0  ;;  %v161_v58 = vpack.c.bf16 %v141_v57, %v140_v55  ;;  %v142_v59 = vld [vmem:[%s3066_s1 + $0xc0] sm:$0xff] }
 0x171   :  { %v510_v2 = vmax.f32 %v415_v61, 0.0  ;;  %v162_v61 = vpack.c.bf16 %v143_v60, %v142_v59 }
 0x172   :  { %v551_v3 = vpack.c.bf16 %v509_v63, %v507_v62  ;;  %v144_v62 = vld [vmem:[%s3066_s1 + $0xd0] sm:$0xff]  ;;  %v145_v63 = vld [vmem:[%s3066_s1 + $0xd8] sm:$0xff] }
 0x173   :  { %v552_v4 = vpack.c.bf16 %v510_v2, %v508_v1  ;;  %v418_v5 = vpop.f32.mrb[44].mxu0  ;;  %v163_v1 = vpack.c.bf16 %v145_v63, %v144_v62  ;;  %v146_v2 = vld [vmem:[%s3066_s1 + $0xe0] sm:$0xff] }
 0x174   :  { %v419_v6 = vadd.f32 %v418_v5, %v2462_v22  ;;  %v420_v7 = vpop.f32.mrb[45].mxu0  ;;  %v148_v5 = vld [vmem:[%s3066_s1 + $0xf0] sm:$0xff] }
 0x175   :  { %v421_v8 = vadd.f32 %v420_v7, %v2464_v23  ;;  %v422_v9 = vpop.f32.mrb[46].mxu0  ;;  %810 = vmatprep.mubr.bf16.mxu1 %v552_v4 }
 0x176   :  { %v423_v10 = vadd.f32 %v422_v9, %v2462_v22  ;;  %v424_v11 = vpop.f32.mrb[47].mxu0  ;;  %811 = vmatmul.mubr.bf16.gmra.mrb[56].mxu1 %v551_v3  ;;  %v511_v15 = vmax.f32 %v419_v6, 0.0  ;;  %v2191_v22 = vld [vmem:[%s3071_s6 + $0x20] sm:$0xff]   ;;  %v147_v3 = vld [vmem:[%s3066_s1 + $0xe8] sm:$0xff]  ;;  %v149_v6 = vld [vmem:[%s3066_s1 + $0xf8] sm:$0xff] }
 0x177   :  { %v425_v12 = vadd.f32 %v424_v11, %v2464_v23  ;;  %v512_v0 = vmax.f32 %v421_v8, 0.0  ;;  %2001 = vmatprep.subr.bf16.mxu0 %v2191_v22  ;;  %v2192_v23 = vld [vmem:[%s3071_s6 + $0x28] sm:$0xff]   ;;  %v164_v4 = vpack.c.bf16 %v147_v3, %v146_v2  ;;  %v165_v7 = vpack.c.bf16 %v149_v6, %v148_v5  ;;  %v2695_v9 = vld [vmem:[%s3070_s5] ss:$0 sm:$0xff] }
 0x178   :  { %v513_v16 = vmax.f32 %v423_v10, 0.0  ;;  %2002 = vmatpush3.bf16.msra.mxu0 %v2191_v22 }
 0x179   :  { %v514_v19 = vmax.f32 %v425_v12, 0.0  ;;  %2003 = vmatprep.subr.bf16.mxu0 %v2192_v23 }
 0x17a   :  { %v553_v21 = vpack.c.bf16 %v513_v16, %v511_v15 }
 0x17b   :  { %v554_v24 = vpack.c.bf16 %v514_v19, %v512_v0  ;;  %v2195_v0 = vld [vmem:[%s3075_s10] sm:$0xff]  }
 0x17c   :  { %2004 = vmatpush3.bf16.msra.mxu0 %v2192_v23 }
 0x17d   :  { %818 = vmatprep.mubr.bf16.mxu1 %v554_v24  ;;  %2005 = vmatprep.subr.bf16.mxu0 %v2193_v25 }
 0x17e   :  { %819 = vmatmul.mubr.bf16.gmra.mrb[60].mxu1 %v553_v21 }
 0x17f   :  { %826 = vmatprep.mubr.bf16.mxu1 %v2488_v56  ;;  %v2194_v56 = vld [vmem:[%s3071_s6 + $0x38] sm:$0xff]  }
 0x180   :  { %2006 = vmatpush3.bf16.msra.mxu0 %v2193_v25 }
 0x181   :  { %2007 = vmatprep.subr.bf16.mxu0 %v2194_v56 }
 0x184   :  { %2008 = vmatpush3.bf16.msra.mxu0 %v2194_v56 }
 0x185   :  { %2075 = vmatprep.subr.bf16.mxu0 %v2195_v0 }
 0x186   :  { %827 = vmatmul.mubr.bf16.gmra.mrb[64].mxu1 %v2483_v52  ;;  %v118_v52 = vld [vmem:[%s3066_s1] sm:$0xff] }
 0x187   :  { %834 = vmatprep.mubr.bf16.mxu1 %v2500_v20  ;;  %v119_v20 = vld [vmem:[%s3066_s1 + $0x8] sm:$0xff] }
 0x188   :  { %v150_v26 = vpack.c.bf16 %v119_v20, %v118_v52 }
 0x18e   :  { %835 = vmatmul.mubr.bf16.gmra.mrb[68].mxu1 %v2498_v18  ;;  %v120_v18 = vld [vmem:[%s3066_s1 + $0x10] sm:$0xff] }
 0x18f   :  { %842 = vmatprep.mubr.bf16.mxu1 %v2512_v50  ;;  %v122_v50 = vld [vmem:[%s3066_s1 + $0x20] sm:$0xff] }
 0x196   :  { %843 = vmatmul.mubr.bf16.gmra.mrb[72].mxu1 %v2510_v47  ;;  %v121_v47 = vld [vmem:[%s3066_s1 + $0x18] sm:$0xff] }
 0x197   :  { %850 = vmatprep.mubr.bf16.mxu1 %v2524_v17  ;;  %v123_v17 = vld [vmem:[%s3066_s1 + $0x28] sm:$0xff]  ;;  %v151_v27 = vpack.c.bf16 %v121_v47, %v120_v18 }
 0x19e   :  { %851 = vmatmul.mubr.bf16.gmra.mrb[76].mxu1 %v2522_v14  ;;  %v152_v14 = vpack.c.bf16 %v123_v17, %v122_v50 }
 0x19f   :  { %2043 = vmatprep.mubr.msk.bf16.mxu1 %vm1186_vm0, %v150_v26 }
 0x1a6   :  { %2044 = vmatmul.mubr.msk.bf16.vlgmr.msra.gmra.mrb[80].mxu1 %vm1186_vm0, %v151_v27 }
 0x1a7   :  { %2047 = vmatprep.mubr.msk.bf16.mxu1 %vm1186_vm0, %v152_v14 }
 0x1ae   :  { %2048 = vmatmul.mubr.msk.bf16.gmra.mrb[84].mxu1 %vm1186_vm0, %v153_v32 }
 0x1af   :  { %2051 = vmatprep.mubr.msk.bf16.mxu1 %vm1186_vm0, %v154_v33 }
 0x1b6   :  { %2052 = vmatmul.mubr.msk.bf16.gmra.mrb[88].mxu1 %vm1186_vm0, %v155_v36  ;;  %v2197_v36 = vld [vmem:[%s3075_s10 + $0x10] sm:$0xff]  }
 0x1b7   :  { %2055 = vmatprep.mubr.msk.bf16.mxu1 %vm1186_vm0, %v156_v39 }
 0x1be   :  { %2056 = vmatmul.mubr.msk.bf16.gmra.mrb[92].mxu1 %vm1186_vm0, %v157_v42 }
 0x1bf   :  { %2059 = vmatprep.mubr.msk.bf16.mxu1 %vm1186_vm0, %v158_v45 }
 0x1c6   :  { %2060 = vmatmul.mubr.msk.bf16.gmra.mrb[96].mxu1 %vm1186_vm0, %v159_v49 }
 0x1c7   :  { %2063 = vmatprep.mubr.msk.bf16.mxu1 %vm1186_vm0, %v160_v54 }
 0x1ce   :  { %2064 = vmatmul.mubr.msk.bf16.gmra.mrb[100].mxu1 %vm1186_vm0, %v161_v58 }
 0x1cf   :  { %2067 = vmatprep.mubr.msk.bf16.mxu1 %vm1186_vm0, %v162_v61 }
 0x1d6   :  { %2068 = vmatmul.mubr.msk.bf16.gmra.mrb[104].mxu1 %vm1186_vm0, %v163_v1 }
 0x1d7   :  { %2071 = vmatprep.mubr.msk.bf16.mxu1 %vm1186_vm0, %v164_v4 }
 0x1de   :  { %2072 = vmatmul.mubr.msk.bf16.gmra.mrb[108].mxu1 %vm1186_vm0, %v165_v7 }
 0x1f9   :  { %v1832_v8 = vpop.f32.mrb[16].mxu1 }
 0x1fa   :  { %v1833_v10 = vpop.f32.mrb[17].mxu1 }
 0x1fb   :  { %v1834_v11 = vadd.f32 %v1833_v10, %v1832_v8  ;;  %v1835_v12 = vpop.f32.mrb[18].mxu1 }
 0x1fc   :  { %v1836_v13 = vpop.f32.mrb[19].mxu1 }
 0x1fd   :  { %v733_v15 = vadd.f32 %v1834_v11, %v2695_v9  ;;  %v1837_v16 = vadd.f32 %v1836_v13, %v1835_v12 }
 0x1ff   :  { %v736_v19 = vadd.f32 %v1837_v16, %v2695_v9  ;;  %v859_v21 = vmax.f32 %v733_v15, 0.0 }
 0x201   :  { %v860_v24 = vmax.f32 %v736_v19, 0.0  ;;  %v1838_v22 = vpop.f32.mrb[20].mxu1 }
 0x202   :  { %v1839_v23 = vpop.f32.mrb[21].mxu1 }
 0x203   :  { %v1840_v25 = vadd.f32 %v1839_v23, %v1838_v22  ;;  %v1841_v56 = vpop.f32.mrb[22].mxu1  ;;  %v891_v52 = vpack.c.bf16 %v860_v24, %v859_v21 }
 0x204   :  { %v1842_v20 = vpop.f32.mrb[23].mxu1 }
 0x205   :  { %v741_v26 = vadd.f32 %v1840_v25, %v2695_v9  ;;  %v1843_v18 = vadd.f32 %v1842_v20, %v1841_v56  ;;  %2009 = vmatprep.mubr.bf16.mxu0 %v891_v52 }
 0x207   :  { %v744_v47 = vadd.f32 %v1843_v18, %v2695_v9  ;;  %v861_v50 = vmax.f32 %v741_v26, 0.0 }
 0x209   :  { %v862_v17 = vmax.f32 %v744_v47, 0.0  ;;  %v1844_v27 = vpop.f32.mrb[24].mxu1 }
 0x20a   :  { %v1845_v14 = vpop.f32.mrb[25].mxu1 }
 0x20b   :  { %v892_v28 = vpack.c.bf16 %v862_v17, %v861_v50  ;;  %v1846_v29 = vadd.f32 %v1845_v14, %v1844_v27  ;;  %v1847_v30 = vpop.f32.mrb[26].mxu1 }
 0x20c   :  { %v1848_v32 = vpop.f32.mrb[27].mxu1 }
 0x20d   :  { %v749_v33 = vadd.f32 %v1846_v29, %v2695_v9  ;;  %v1849_v34 = vadd.f32 %v1848_v32, %v1847_v30  ;;  %2010 = vmatmul.mubr.bf16.vlgmr.msra.gmra.mrb[48].mxu0 %v892_v28 }
 0x20e   :  { %2076 = vmatpush3.bf16.msra.mxu0 %v2195_v0 }
 0x20f   :  { %v752_v35 = vadd.f32 %v1849_v34, %v2695_v9  ;;  %2077 = vmatprep.subr.bf16.mxu0 %v2196_v31  ;;  %v863_v37 = vmax.f32 %v749_v33, 0.0 }
 0x211   :  { %v864_v38 = vmax.f32 %v752_v35, 0.0  ;;  %v1850_v39 = vpop.f32.mrb[28].mxu1 }
 0x212   :  { %v1851_v40 = vpop.f32.mrb[29].mxu1  ;;  %2078 = vmatpush3.bf16.msra.mxu0 %v2196_v31 }
 0x213   :  { %v1852_v41 = vadd.f32 %v1851_v40, %v1850_v39  ;;  %v1853_v42 = vpop.f32.mrb[30].mxu1  ;;  %v893_v43 = vpack.c.bf16 %v864_v38, %v863_v37  ;;  %2079 = vmatprep.subr.bf16.mxu0 %v2197_v36 }
 0x214   :  { %v1854_v45 = vpop.f32.mrb[31].mxu1 }
 0x215   :  { %v757_v46 = vadd.f32 %v1852_v41, %v2695_v9  ;;  %v1855_v48 = vadd.f32 %v1854_v45, %v1853_v42  ;;  %2013 = vmatprep.mubr.bf16.mxu0 %v893_v43 }
 0x216   :  { %2080 = vmatpush3.bf16.msra.mxu0 %v2197_v36 }
 0x217   :  { %v760_v49 = vadd.f32 %v1855_v48, %v2695_v9  ;;  %2081 = vmatprep.subr.bf16.mxu0 %v2198_v44  ;;  %v865_v53 = vmax.f32 %v757_v46, 0.0 }
 0x219   :  { %v866_v54 = vmax.f32 %v760_v49, 0.0  ;;  %v1856_v55 = vpop.f32.mrb[32].mxu1 }
 0x21a   :  { %v1857_v57 = vpop.f32.mrb[33].mxu1  ;;  %2082 = vmatpush3.bf16.msra.mxu0 %v2198_v44 }
 0x21b   :  { %v1858_v58 = vadd.f32 %v1857_v57, %v1856_v55  ;;  %v1859_v59 = vpop.f32.mrb[34].mxu1  ;;  %v894_v60 = vpack.c.bf16 %v866_v54, %v865_v53  ;;  %2083 = vmatprep.subr.bf16.mxu0 %v2199_v51 }
 0x21c   :  { %v1860_v61 = vpop.f32.mrb[35].mxu1 }
 0x21d   :  { %v765_v62 = vadd.f32 %v1858_v58, %v2695_v9  ;;  %v1861_v63 = vadd.f32 %v1860_v61, %v1859_v59  ;;  %2014 = vmatmul.mubr.bf16.gmra.mrb[52].mxu0 %v894_v60 }
 0x21e   :  { %2084 = vmatpush3.bf16.msra.mxu0 %v2199_v51 }
 0x21f   :  { %v768_v1 = vadd.f32 %v1861_v63, %v2695_v9  ;;  %v867_v2 = vmax.f32 %v765_v62, 0.0 }
 0x221   :  { %v868_v3 = vmax.f32 %v768_v1, 0.0  ;;  %v1862_v4 = vpop.f32.mrb[36].mxu1 }
 0x222   :  { %v1863_v5 = vpop.f32.mrb[37].mxu1 }
 0x223   :  { %v1864_v6 = vadd.f32 %v1863_v5, %v1862_v4  ;;  %v1865_v7 = vpop.f32.mrb[38].mxu1  ;;  %v895_v8 = vpack.c.bf16 %v868_v3, %v867_v2 }
 0x224   :  { %v1866_v10 = vpop.f32.mrb[39].mxu1 }
 0x225   :  { %v773_v11 = vadd.f32 %v1864_v6, %v2695_v9  ;;  %v1867_v12 = vadd.f32 %v1866_v10, %v1865_v7  ;;  %2017 = vmatprep.mubr.bf16.mxu0 %v895_v8 }
 0x227   :  { %v776_v13 = vadd.f32 %v1867_v12, %v2695_v9  ;;  %v869_v15 = vmax.f32 %v773_v11, 0.0 }
 0x229   :  { %v870_v16 = vmax.f32 %v776_v13, 0.0  ;;  %v1868_v0 = vpop.f32.mrb[40].mxu1 }
 0x22a   :  { %v1869_v19 = vpop.f32.mrb[41].mxu1 }
 0x22b   :  { %v1870_v21 = vadd.f32 %v1869_v19, %v1868_v0  ;;  %v1871_v24 = vpop.f32.mrb[42].mxu1  ;;  %v896_v22 = vpack.c.bf16 %v870_v16, %v869_v15 }
 0x22c   :  { %v1872_v23 = vpop.f32.mrb[43].mxu1 }
 0x22d   :  { %v781_v25 = vadd.f32 %v1870_v21, %v2695_v9  ;;  %v1873_v56 = vadd.f32 %v1872_v23, %v1871_v24  ;;  %2018 = vmatmul.mubr.bf16.gmra.mrb[56].mxu0 %v896_v22 }
 0x22f   :  { %v784_v52 = vadd.f32 %v1873_v56, %v2695_v9  ;;  %v871_v20 = vmax.f32 %v781_v25, 0.0 }
 0x231   :  { %v872_v26 = vmax.f32 %v784_v52, 0.0  ;;  %v1874_v18 = vpop.f32.mrb[44].mxu1 }
 0x232   :  { %v1875_v47 = vpop.f32.mrb[45].mxu1 }
 0x233   :  { %v1876_v50 = vadd.f32 %v1875_v47, %v1874_v18  ;;  %v1877_v17 = vpop.f32.mrb[46].mxu1  ;;  %v897_v27 = vpack.c.bf16 %v872_v26, %v871_v20  ;;  %v2200_v47 = vld [vmem:[%s3075_s10 + $0x28] sm:$0xff]  }
 0x234   :  { %v1878_v14 = vpop.f32.mrb[47].mxu1  ;;  %2085 = vmatprep.subr.bf16.mxu0 %v2200_v47 }
 0x235   :  { %v789_v28 = vadd.f32 %v1876_v50, %v2695_v9  ;;  %v1879_v29 = vadd.f32 %v1878_v14, %v1877_v17  ;;  %2021 = vmatprep.mubr.bf16.mxu0 %v897_v27  ;;  %2086 = vmatpush3.bf16.msra.mxu0 %v2200_v47 }
 0x237   :  { %v792_v30 = vadd.f32 %v1879_v29, %v2695_v9  ;;  %v873_v31 = vmax.f32 %v789_v28, 0.0 }
 0x239   :  { %v874_v32 = vmax.f32 %v792_v30, 0.0  ;;  %v1880_v33 = vpop.f32.mrb[48].mxu1 }
 0x23a   :  { %v1881_v34 = vpop.f32.mrb[49].mxu1 }
 0x23b   :  { %v1882_v35 = vadd.f32 %v1881_v34, %v1880_v33  ;;  %v1883_v36 = vpop.f32.mrb[50].mxu1  ;;  %v898_v37 = vpack.c.bf16 %v874_v32, %v873_v31  ;;  %v2201_v31 = vld [vmem:[%s3075_s10 + $0x30] sm:$0xff]  }
 0x23c   :  { %v1884_v38 = vpop.f32.mrb[51].mxu1  ;;  %2087 = vmatprep.subr.bf16.mxu0 %v2201_v31 }
 0x23d   :  { %v797_v39 = vadd.f32 %v1882_v35, %v2695_v9  ;;  %v1885_v40 = vadd.f32 %v1884_v38, %v1883_v36  ;;  %2022 = vmatmul.mubr.bf16.gmra.mrb[60].mxu0 %v898_v37  ;;  %v2202_v36 = vld [vmem:[%s3075_s10 + $0x38] sm:$0xff]  }
 0x23e   :  { %2088 = vmatpush3.bf16.msra.mxu0 %v2201_v31 }
 0x23f   :  { %v800_v41 = vadd.f32 %v1885_v40, %v2695_v9  ;;  %v875_v42 = vmax.f32 %v797_v39, 0.0  ;;  %2089 = vmatprep.subr.bf16.mxu0 %v2202_v36 }
 0x241   :  { %v876_v43 = vmax.f32 %v800_v41, 0.0  ;;  %v1886_v44 = vpop.f32.mrb[52].mxu1 }
 0x242   :  { %v1887_v45 = vpop.f32.mrb[53].mxu1  ;;  %2090 = vmatpush3.bf16.msra.mxu0 %v2202_v36 }
 0x243   :  { %v1888_v46 = vadd.f32 %v1887_v45, %v1886_v44  ;;  %v1889_v48 = vpop.f32.mrb[54].mxu1  ;;  %v899_v49 = vpack.c.bf16 %v876_v43, %v875_v42 }
 0x244   :  { %v1890_v51 = vpop.f32.mrb[55].mxu1 }
 0x245   :  { %v805_v53 = vadd.f32 %v1888_v46, %v2695_v9  ;;  %v1891_v54 = vadd.f32 %v1890_v51, %v1889_v48  ;;  %2025 = vmatprep.mubr.bf16.mxu0 %v899_v49 }
 0x247   :  { %v808_v55 = vadd.f32 %v1891_v54, %v2695_v9  ;;  %v877_v57 = vmax.f32 %v805_v53, 0.0 }
 0x249   :  { %v878_v58 = vmax.f32 %v808_v55, 0.0  ;;  %v1892_v59 = vpop.f32.mrb[56].mxu1 }
 0x24a   :  { %v1893_v60 = vpop.f32.mrb[57].mxu1 }
 0x24b   :  { %v1894_v61 = vadd.f32 %v1893_v60, %v1892_v59  ;;  %v1895_v62 = vpop.f32.mrb[58].mxu1  ;;  %v900_v63 = vpack.c.bf16 %v878_v58, %v877_v57 }
 0x24c   :  { %v1896_v1 = vpop.f32.mrb[59].mxu1 }
 0x24d   :  { %v813_v2 = vadd.f32 %v1894_v61, %v2695_v9  ;;  %v1897_v3 = vadd.f32 %v1896_v1, %v1895_v62  ;;  %2026 = vmatmul.mubr.bf16.gmra.mrb[64].mxu0 %v900_v63 }
 0x24f   :  { %v816_v4 = vadd.f32 %v1897_v3, %v2695_v9  ;;  %v879_v5 = vmax.f32 %v813_v2, 0.0 }
 0x251   :  { %v880_v6 = vmax.f32 %v816_v4, 0.0  ;;  %v1898_v7 = vpop.f32.mrb[60].mxu1 }
 0x252   :  { %v1899_v8 = vpop.f32.mrb[61].mxu1 }
 0x253   :  { %v1900_v10 = vadd.f32 %v1899_v8, %v1898_v7  ;;  %v1901_v11 = vpop.f32.mrb[62].mxu1  ;;  %v901_v12 = vpack.c.bf16 %v880_v6, %v879_v5 }
 0x254   :  { %v1902_v13 = vpop.f32.mrb[63].mxu1 }
 0x255   :  { %v821_v15 = vadd.f32 %v1900_v10, %v2695_v9  ;;  %v1903_v16 = vadd.f32 %v1902_v13, %v1901_v11  ;;  %2029 = vmatprep.mubr.bf16.mxu0 %v901_v12 }
 0x257   :  { %v824_v0 = vadd.f32 %v1903_v16, %v2695_v9  ;;  %v881_v19 = vmax.f32 %v821_v15, 0.0 }
 0x259   :  { %v882_v21 = vmax.f32 %v824_v0, 0.0  ;;  %v1904_v24 = vpop.f32.mrb[64].mxu1 }
 0x25a   :  { %v1905_v22 = vpop.f32.mrb[65].mxu1 }
 0x25b   :  { %v1906_v23 = vadd.f32 %v1905_v22, %v1904_v24  ;;  %v1907_v25 = vpop.f32.mrb[66].mxu1  ;;  %v902_v56 = vpack.c.bf16 %v882_v21, %v881_v19 }
 0x25c   :  { %v1908_v52 = vpop.f32.mrb[67].mxu1 }
 0x25d   :  { %v829_v20 = vadd.f32 %v1906_v23, %v2695_v9  ;;  %v1909_v26 = vadd.f32 %v1908_v52, %v1907_v25  ;;  %2030 = vmatmul.mubr.bf16.gmra.mrb[68].mxu0 %v902_v56 }
 0x25f   :  { %v832_v18 = vadd.f32 %v1909_v26, %v2695_v9  ;;  %v883_v50 = vmax.f32 %v829_v20, 0.0 }
 0x261   :  { %v884_v17 = vmax.f32 %v832_v18, 0.0  ;;  %v1910_v27 = vpop.f32.mrb[68].mxu1 }
 0x262   :  { %v1911_v14 = vpop.f32.mrb[69].mxu1 }
 0x263   :  { %v1912_v28 = vadd.f32 %v1911_v14, %v1910_v27  ;;  %v1913_v29 = vpop.f32.mrb[70].mxu1  ;;  %v903_v30 = vpack.c.bf16 %v884_v17, %v883_v50 }
 0x264   :  { %v1914_v32 = vpop.f32.mrb[71].mxu1 }
 0x265   :  { %v837_v33 = vadd.f32 %v1912_v28, %v2695_v9  ;;  %v1915_v34 = vadd.f32 %v1914_v32, %v1913_v29  ;;  %2033 = vmatprep.mubr.bf16.mxu0 %v903_v30  ;;  %v2805_v30 = vld [vmem:[%s3074_s9] ss:$0 sm:$0xff] }
 0x266   :  { %v2811_v32 = vld [vmem:[%s3072_s7] ss:$0 sm:$0xff] }
 0x267   :  { %v840_v35 = vadd.f32 %v1915_v34, %v2695_v9  ;;  %v885_v37 = vmax.f32 %v837_v33, 0.0 }
 0x269   :  { %v886_v38 = vmax.f32 %v840_v35, 0.0  ;;  %v1916_v39 = vpop.f32.mrb[72].mxu1 }
 0x26a   :  { %v1917_v40 = vpop.f32.mrb[73].mxu1 }
 0x26b   :  { %v1918_v41 = vadd.f32 %v1917_v40, %v1916_v39  ;;  %v1919_v42 = vpop.f32.mrb[74].mxu1  ;;  %v904_v43 = vpack.c.bf16 %v886_v38, %v885_v37 }
 0x26c   :  { %v1920_v44 = vpop.f32.mrb[75].mxu1 }
 0x26d   :  { %v845_v45 = vadd.f32 %v1918_v41, %v2695_v9  ;;  %v1921_v46 = vadd.f32 %v1920_v44, %v1919_v42  ;;  %2034 = vmatmul.mubr.bf16.gmra.mrb[72].mxu0 %v904_v43 }
 0x26f   :  { %v848_v48 = vadd.f32 %v1921_v46, %v2695_v9  ;;  %v887_v49 = vmax.f32 %v845_v45, 0.0 }
 0x271   :  { %v888_v51 = vmax.f32 %v848_v48, 0.0  ;;  %v1922_v53 = vpop.f32.mrb[76].mxu1 }
 0x272   :  { %v1923_v54 = vpop.f32.mrb[77].mxu1 }
 0x273   :  { %v1924_v55 = vadd.f32 %v1923_v54, %v1922_v53  ;;  %v1925_v57 = vpop.f32.mrb[78].mxu1  ;;  %v905_v58 = vpack.c.bf16 %v888_v51, %v887_v49 }
 0x274   :  { %v1926_v59 = vpop.f32.mrb[79].mxu1 }
 0x275   :  { %v853_v60 = vadd.f32 %v1924_v55, %v2695_v9  ;;  %v1927_v61 = vadd.f32 %v1926_v59, %v1925_v57  ;;  %2037 = vmatprep.mubr.bf16.mxu0 %v905_v58 }
 0x277   :  { %v856_v62 = vadd.f32 %v1927_v61, %v2695_v9  ;;  %v889_v63 = vmax.f32 %v853_v60, 0.0 }
 0x279   :  { %v890_v1 = vmax.f32 %v856_v62, 0.0  ;;  %v2045_v2 = vpop.f32.mrb[80].mxu1 }
 0x27a   :  { %v1269_v3 = vpop.f32.mrb[81].mxu1  ;;  %v1278_v31 = vadd.f32 %v2045_v2, %v2805_v30 }
 0x27b   :  { %v906_v4 = vpack.c.bf16 %v890_v1, %v889_v63  ;;  %v2046_v5 = vpop.f32.mrb[82].mxu1  ;;  %v1270_v33 = vadd.f32 %v2805_v30, %v1269_v3 }
 0x27c   :  { %v1272_v6 = vpop.f32.mrb[83].mxu1  ;;  %v1281_v34 = vadd.f32 %v2046_v5, %v2805_v30  ;;  %v1398_v38 = vmax.f32 %v1278_v31, 0.0 }
 0x27d   :  { %2038 = vmatmul.mubr.bf16.gmra.mrb[76].mxu0 %v906_v4  ;;  %v1273_v36 = vadd.f32 %v2805_v30, %v1272_v6  ;;  %v1396_v41 = vmax.f32 %v1270_v33, 0.0 }
 0x27e   :  { %v1399_v45 = vmax.f32 %v1281_v34, 0.0 }
 0x27f   :  { %v1397_v51 = vmax.f32 %v1273_v36, 0.0 }
 0x281   :  { %v2049_v7 = vpop.f32.mrb[84].mxu1 }
 0x282   :  { %v1285_v8 = vpop.f32.mrb[85].mxu1  ;;  %v1294_v62 = vadd.f32 %v2049_v7, %v2805_v30 }
 0x283   :  { %v2050_v10 = vpop.f32.mrb[86].mxu1  ;;  %v1286_v63 = vadd.f32 %v2805_v30, %v1285_v8 }
 0x284   :  { %v1288_v11 = vpop.f32.mrb[87].mxu1  ;;  %v1297_v1 = vadd.f32 %v2050_v10, %v2805_v30  ;;  %v1402_v5 = vmax.f32 %v1294_v62, 0.0 }
 0x285   :  { %v1289_v3 = vadd.f32 %v2805_v30, %v1288_v11  ;;  %v1400_v33 = vmax.f32 %v1286_v63, 0.0 }
 0x287   :  { %v1401_v10 = vmax.f32 %v1289_v3, 0.0 }
 0x289   :  { %v2754_v12 = vpop.f32.mrb[88].mxu1 }
 0x28a   :  { %v2756_v13 = vpop.f32.mrb[89].mxu1 }
 0x28b   :  { %v2758_v15 = vpop.f32.mrb[90].mxu1 }
 0x28c   :  { %v2760_v16 = vpop.f32.mrb[91].mxu1 }
 0x291   :  { %v2762_v9 = vpop.f32.mrb[92].mxu1 }
 0x292   :  { %v2764_v0 = vpop.f32.mrb[93].mxu1 }
 0x293   :  { %v2766_v19 = vpop.f32.mrb[94].mxu1 }
 0x294   :  { %v2768_v21 = vpop.f32.mrb[95].mxu1 }
 0x299   :  { %v2770_v24 = vpop.f32.mrb[96].mxu1 }
 0x29a   :  { %v2772_v22 = vpop.f32.mrb[97].mxu1 }
 0x29b   :  { %v2774_v23 = vpop.f32.mrb[98].mxu1 }
 0x29c   :  { %v2776_v25 = vpop.f32.mrb[99].mxu1 }
 0x2a1   :  { %v2778_v56 = vpop.f32.mrb[100].mxu1 }
 0x2a2   :  { %v2780_v52 = vpop.f32.mrb[101].mxu1 }
 0x2a3   :  { %v2782_v20 = vpop.f32.mrb[102].mxu1 }
 0x2a4   :  { %v2784_v26 = vpop.f32.mrb[103].mxu1 }
 0x2a9   :  { %v2786_v18 = vpop.f32.mrb[104].mxu1 }
 0x2aa   :  { %v2788_v47 = vpop.f32.mrb[105].mxu1 }
 0x2ab   :  { %v2790_v50 = vpop.f32.mrb[106].mxu1 }
 0x2ac   :  { %v2792_v17 = vpop.f32.mrb[107].mxu1 }
 0x2b1   :  { %v2794_v27 = vpop.f32.mrb[108].mxu1 }
 0x2b2   :  { %v2796_v14 = vpop.f32.mrb[109].mxu1 }
 0x2b3   :  { %v2798_v28 = vpop.f32.mrb[110].mxu1 }
 0x2b4   :  { %v2800_v29 = vpop.f32.mrb[111].mxu1 }
 0x2e0   :  { %v2011_v35 = vpop.f32.mrb[48].mxu0 }
 0x2e1   :  { %v1021_v37 = vadd.f32 %v2011_v35, %v2811_v32  ;;  %v1012_v39 = vpop.f32.mrb[49].mxu0 }
 0x2e2   :  { %v1013_v40 = vadd.f32 %v2811_v32, %v1012_v39  ;;  %v2012_v42 = vpop.f32.mrb[50].mxu0 }
 0x2e3   :  { %v1141_v43 = vmax.f32 %v1021_v37, 0.0  ;;  %v1024_v44 = vadd.f32 %v2012_v42, %v2811_v32  ;;  %v1015_v46 = vpop.f32.mrb[51].mxu0  ;;  %v1403_v37 = vmax.f32 %v1297_v1, 0.0 }
 0x2e4   :  { %v1139_v48 = vmax.f32 %v1013_v40, 0.0  ;;  %v1016_v49 = vadd.f32 %v2811_v32, %v1015_v46  ;;  %v1310_v46 = vadd.f32 %v2754_v12, %v2805_v30 }
 0x2e5   :  { %v1430_v53 = vadd.f32 %v1398_v38, %v1141_v43  ;;  %v1142_v54 = vmax.f32 %v1024_v44, 0.0 }
 0x2e6   :  { %v1428_v55 = vadd.f32 %v1396_v41, %v1139_v48  ;;  %v1140_v57 = vmax.f32 %v1016_v49, 0.0  ;;  %v1302_v48 = vadd.f32 %v2805_v30, %v2756_v13  ;;  %v1313_v49 = vadd.f32 %v2758_v15, %v2805_v30 }
 0x2e7   :  { %v1431_v58 = vadd.f32 %v1399_v45, %v1142_v54 }
 0x2e8   :  { %v1429_v59 = vadd.f32 %v1397_v51, %v1140_v57  ;;  %v1407_v62 = vmax.f32 %v1313_v49, 0.0 }
 0x2e9   :  { %v1461_v60 = vpack.c.bf16 %v1431_v58, %v1430_v53  ;;  %v1305_v53 = vadd.f32 %v2805_v30, %v2760_v16 }
 0x2ea   :  { %v1460_v61 = vpack.c.bf16 %v1429_v59, %v1428_v55  ;;  %v1406_v55 = vmax.f32 %v1310_v46, 0.0  ;;  %v1404_v59 = vmax.f32 %v1302_v48, 0.0 }
 0x2eb   :  { %v1405_v1 = vmax.f32 %v1305_v53, 0.0 }
 0x2ec   :  { %2091 = vmatprep.mubr.bf16.mxu0 %v1460_v61 }
 0x2ed   :  { %2092 = vmatmul.mubr.bf16.vlgmr.msra.gmra.mrb[80].mxu0 %v1461_v60 }
 0x2f0   :  { %v2015_v2 = vpop.f32.mrb[52].mxu0 }
 0x2f1   :  { %v1037_v4 = vadd.f32 %v2015_v2, %v2811_v32  ;;  %v1028_v6 = vpop.f32.mrb[53].mxu0 }
 0x2f2   :  { %v1029_v31 = vadd.f32 %v2811_v32, %v1028_v6  ;;  %v2016_v34 = vpop.f32.mrb[54].mxu0 }
 0x2f3   :  { %v1145_v35 = vmax.f32 %v1037_v4, 0.0  ;;  %v1040_v36 = vadd.f32 %v2016_v34, %v2811_v32  ;;  %v1031_v7 = vpop.f32.mrb[55].mxu0  ;;  %v1326_v34 = vadd.f32 %v2762_v9, %v2805_v30 }
 0x2f4   :  { %v1143_v38 = vmax.f32 %v1029_v31, 0.0  ;;  %v1032_v8 = vadd.f32 %v2811_v32, %v1031_v7  ;;  %v1321_v7 = vadd.f32 %v2805_v30, %v2768_v21 }
 0x2f5   :  { %v1434_v39 = vadd.f32 %v1402_v5, %v1145_v35  ;;  %v1146_v40 = vmax.f32 %v1040_v36, 0.0  ;;  %v1318_v35 = vadd.f32 %v2805_v30, %v2764_v0  ;;  %v1329_v36 = vadd.f32 %v2766_v19, %v2805_v30 }
 0x2f6   :  { %v1432_v11 = vadd.f32 %v1400_v33, %v1143_v38  ;;  %v1144_v41 = vmax.f32 %v1032_v8, 0.0  ;;  %v1410_v8 = vmax.f32 %v1326_v34, 0.0 }
 0x2f7   :  { %v1435_v42 = vadd.f32 %v1403_v37, %v1146_v40  ;;  %v1408_v40 = vmax.f32 %v1318_v35, 0.0 }
 0x2f8   :  { %v1433_v43 = vadd.f32 %v1401_v10, %v1144_v41 }
 0x2f9   :  { %v1463_v44 = vpack.c.bf16 %v1435_v42, %v1434_v39  ;;  %v1411_v42 = vmax.f32 %v1329_v36, 0.0  ;;  %v1358_v36 = vadd.f32 %v2778_v56, %v2805_v30 }
 0x2fa   :  { %v1462_v45 = vpack.c.bf16 %v1433_v43, %v1432_v11 }
 0x2fc   :  { %2095 = vmatprep.mubr.bf16.mxu0 %v1462_v45 }
 0x2fd   :  { %2096 = vmatmul.mubr.bf16.gmra.mrb[84].mxu0 %v1463_v44  ;;  %v1409_v44 = vmax.f32 %v1321_v7, 0.0  ;;  %v1361_v7 = vadd.f32 %v2782_v20, %v2805_v30 }
 0x300   :  { %v2019_v51 = vpop.f32.mrb[56].mxu0 }
 0x301   :  { %v1053_v54 = vadd.f32 %v2019_v51, %v2811_v32  ;;  %v1044_v57 = vpop.f32.mrb[57].mxu0 }
 0x302   :  { %v1045_v58 = vadd.f32 %v2811_v32, %v1044_v57  ;;  %v2020_v60 = vpop.f32.mrb[58].mxu0  ;;  %v1334_v57 = vadd.f32 %v2805_v30, %v2772_v22 }
 0x303   :  { %v1149_v61 = vmax.f32 %v1053_v54, 0.0  ;;  %v1056_v12 = vadd.f32 %v2020_v60, %v2811_v32  ;;  %v1047_v13 = vpop.f32.mrb[59].mxu0  ;;  %v1337_v60 = vadd.f32 %v2805_v30, %v2776_v25 }
 0x304   :  { %v1147_v63 = vmax.f32 %v1045_v58, 0.0  ;;  %v1048_v15 = vadd.f32 %v2811_v32, %v1047_v13  ;;  %v1345_v58 = vadd.f32 %v2774_v23, %v2805_v30 }
 0x305   :  { %v1438_v2 = vadd.f32 %v1406_v55, %v1149_v61  ;;  %v1150_v3 = vmax.f32 %v1056_v12, 0.0  ;;  %v1342_v55 = vadd.f32 %v2770_v24, %v2805_v30 }
 0x306   :  { %v1436_v16 = vadd.f32 %v1404_v59, %v1147_v63  ;;  %v1148_v4 = vmax.f32 %v1048_v15, 0.0  ;;  %v1412_v63 = vmax.f32 %v1334_v57, 0.0 }
 0x307   :  { %v1439_v5 = vadd.f32 %v1407_v62, %v1150_v3  ;;  %v1414_v12 = vmax.f32 %v1342_v55, 0.0  ;;  %v1377_v55 = vadd.f32 %v2790_v50, %v2805_v30 }
 0x308   :  { %v1437_v6 = vadd.f32 %v1405_v1, %v1148_v4 }
 0x309   :  { %v1465_v31 = vpack.c.bf16 %v1439_v5, %v1438_v2  ;;  %v1415_v2 = vmax.f32 %v1345_v58, 0.0  ;;  %v1369_v58 = vadd.f32 %v2805_v30, %v2792_v17 }
 0x30a   :  { %v1464_v33 = vpack.c.bf16 %v1437_v6, %v1436_v16  ;;  %v1413_v16 = vmax.f32 %v1337_v60, 0.0 }
 0x30c   :  { %2099 = vmatprep.mubr.bf16.mxu0 %v1464_v33 }
 0x30d   :  { %2100 = vmatmul.mubr.bf16.gmra.mrb[88].mxu0 %v1465_v31 }
 0x310   :  { %v2023_v37 = vpop.f32.mrb[60].mxu0 }
 0x311   :  { %v1069_v38 = vadd.f32 %v2023_v37, %v2811_v32  ;;  %v1060_v10 = vpop.f32.mrb[61].mxu0  ;;  %v1350_v37 = vadd.f32 %v2805_v30, %v2780_v52 }
 0x312   :  { %v1061_v39 = vadd.f32 %v2811_v32, %v1060_v10  ;;  %v2024_v11 = vpop.f32.mrb[62].mxu0 }
 0x313   :  { %v1153_v41 = vmax.f32 %v1069_v38, 0.0  ;;  %v1072_v9 = vadd.f32 %v2024_v11, %v2811_v32  ;;  %v1063_v0 = vpop.f32.mrb[63].mxu0 }
 0x314   :  { %v1151_v43 = vmax.f32 %v1061_v39, 0.0  ;;  %v1064_v19 = vadd.f32 %v2811_v32, %v1063_v0  ;;  %v1418_v39 = vmax.f32 %v1358_v36, 0.0  ;;  %v1419_v0 = vmax.f32 %v1361_v7, 0.0 }
 0x315   :  { %v1442_v45 = vadd.f32 %v1410_v8, %v1153_v41  ;;  %v1154_v46 = vmax.f32 %v1072_v9, 0.0  ;;  %v1353_v8 = vadd.f32 %v2805_v30, %v2784_v26  ;;  %v1416_v41 = vmax.f32 %v1350_v37, 0.0 }
 0x316   :  { %v1440_v21 = vadd.f32 %v1408_v40, %v1151_v43  ;;  %v1152_v48 = vmax.f32 %v1064_v19, 0.0  ;;  %v1385_v7 = vadd.f32 %v2805_v30, %v2800_v29 }
 0x317   :  { %v1443_v49 = vadd.f32 %v1411_v42, %v1154_v46  ;;  %v1417_v19 = vmax.f32 %v1353_v8, 0.0 }
 0x318   :  { %v1441_v51 = vadd.f32 %v1409_v44, %v1152_v48 }
 0x319   :  { %v1467_v53 = vpack.c.bf16 %v1443_v49, %v1442_v45 }
 0x31a   :  { %v1466_v54 = vpack.c.bf16 %v1441_v51, %v1440_v21 }
 0x31c   :  { %2103 = vmatprep.mubr.bf16.mxu0 %v1466_v54  ;;  %v1366_v54 = vadd.f32 %v2805_v30, %v2788_v47 }
 0x31d   :  { %2104 = vmatmul.mubr.bf16.gmra.mrb[92].mxu0 %v1467_v53  ;;  %v1374_v53 = vadd.f32 %v2786_v18, %v2805_v30 }
 0x31f   :  { %v1422_v60 = vmax.f32 %v1374_v53, 0.0 }
 0x320   :  { %v2027_v59 = vpop.f32.mrb[64].mxu0 }
 0x321   :  { %v1085_v61 = vadd.f32 %v2027_v59, %v2811_v32  ;;  %v1076_v62 = vpop.f32.mrb[65].mxu0 }
 0x322   :  { %v1077_v13 = vadd.f32 %v2811_v32, %v1076_v62  ;;  %v2028_v15 = vpop.f32.mrb[66].mxu0  ;;  %v1420_v62 = vmax.f32 %v1366_v54, 0.0 }
 0x323   :  { %v1157_v1 = vmax.f32 %v1085_v61, 0.0  ;;  %v1088_v24 = vadd.f32 %v2028_v15, %v2811_v32  ;;  %v1079_v22 = vpop.f32.mrb[67].mxu0  ;;  %v1423_v15 = vmax.f32 %v1377_v55, 0.0 }
 0x324   :  { %v1155_v3 = vmax.f32 %v1077_v13, 0.0  ;;  %v1080_v23 = vadd.f32 %v2811_v32, %v1079_v22 }
 0x325   :  { %v1446_v4 = vadd.f32 %v1414_v12, %v1157_v1  ;;  %v1158_v5 = vmax.f32 %v1088_v24, 0.0  ;;  %v1421_v24 = vmax.f32 %v1369_v58, 0.0 }
 0x326   :  { %v1444_v25 = vadd.f32 %v1412_v63, %v1155_v3  ;;  %v1156_v6 = vmax.f32 %v1080_v23, 0.0 }
 0x327   :  { %v1447_v31 = vadd.f32 %v1415_v2, %v1158_v5 }
 0x328   :  { %v1445_v33 = vadd.f32 %v1413_v16, %v1156_v6  ;;  %v1382_v6 = vadd.f32 %v2805_v30, %v2796_v14 }
 0x329   :  { %v1469_v34 = vpack.c.bf16 %v1447_v31, %v1446_v4 }
 0x32a   :  { %v1468_v35 = vpack.c.bf16 %v1445_v33, %v1444_v25  ;;  %v1390_v25 = vadd.f32 %v2794_v27, %v2805_v30  ;;  %v1424_v37 = vmax.f32 %v1382_v6, 0.0 }
 0x32c   :  { %2107 = vmatprep.mubr.bf16.mxu0 %v1468_v35  ;;  %v1426_v33 = vmax.f32 %v1390_v25, 0.0 }
 0x32d   :  { %2108 = vmatmul.mubr.bf16.gmra.mrb[96].mxu0 %v1469_v34  ;;  %v1393_v34 = vadd.f32 %v2798_v28, %v2805_v30  ;;  %v2903_v30 = vld [vmem:[%s3076_s11] ss:$0 sm:$0xff] }
 0x330   :  { %v2031_v38 = vpop.f32.mrb[68].mxu0 }
 0x331   :  { %v1101_v10 = vadd.f32 %v2031_v38, %v2811_v32  ;;  %v1092_v40 = vpop.f32.mrb[69].mxu0 }
 0x332   :  { %v1093_v11 = vadd.f32 %v2811_v32, %v1092_v40  ;;  %v2032_v9 = vpop.f32.mrb[70].mxu0 }
 0x333   :  { %v1161_v42 = vmax.f32 %v1101_v10, 0.0  ;;  %v1104_v56 = vadd.f32 %v2032_v9, %v2811_v32  ;;  %v1095_v52 = vpop.f32.mrb[71].mxu0  ;;  %v1425_v9 = vmax.f32 %v1385_v7, 0.0 }
 0x334   :  { %v1159_v43 = vmax.f32 %v1093_v11, 0.0  ;;  %v1096_v20 = vadd.f32 %v2811_v32, %v1095_v52  ;;  %v1427_v11 = vmax.f32 %v1393_v34, 0.0 }
 0x335   :  { %v1450_v44 = vadd.f32 %v1418_v39, %v1161_v42  ;;  %v1162_v45 = vmax.f32 %v1104_v56, 0.0 }
 0x336   :  { %v1448_v26 = vadd.f32 %v1416_v41, %v1159_v43  ;;  %v1160_v46 = vmax.f32 %v1096_v20, 0.0 }
 0x337   :  { %v1451_v21 = vadd.f32 %v1419_v0, %v1162_v45 }
 0x338   :  { %v1449_v48 = vadd.f32 %v1417_v19, %v1160_v46 }
 0x339   :  { %v1471_v49 = vpack.c.bf16 %v1451_v21, %v1450_v44 }
 0x33a   :  { %v1470_v51 = vpack.c.bf16 %v1449_v48, %v1448_v26 }
 0x33c   :  { %2111 = vmatprep.mubr.bf16.mxu0 %v1470_v51 }
 0x33d   :  { %2112 = vmatmul.mubr.bf16.gmra.mrb[100].mxu0 %v1471_v49 }
 0x340   :  { %v2035_v57 = vpop.f32.mrb[72].mxu0 }
 0x341   :  { %v1117_v59 = vadd.f32 %v2035_v57, %v2811_v32  ;;  %v1108_v61 = vpop.f32.mrb[73].mxu0 }
 0x342   :  { %v1109_v12 = vadd.f32 %v2811_v32, %v1108_v61  ;;  %v2036_v13 = vpop.f32.mrb[74].mxu0 }
 0x343   :  { %v1165_v63 = vmax.f32 %v1117_v59, 0.0  ;;  %v1120_v18 = vadd.f32 %v2036_v13, %v2811_v32  ;;  %v1111_v47 = vpop.f32.mrb[75].mxu0 }
 0x344   :  { %v1163_v1 = vmax.f32 %v1109_v12, 0.0  ;;  %v1112_v50 = vadd.f32 %v2811_v32, %v1111_v47 }
 0x345   :  { %v1454_v2 = vadd.f32 %v1422_v60, %v1165_v63  ;;  %v1166_v22 = vmax.f32 %v1120_v18, 0.0 }
 0x346   :  { %v1452_v17 = vadd.f32 %v1420_v62, %v1163_v1  ;;  %v1164_v3 = vmax.f32 %v1112_v50, 0.0 }
 0x347   :  { %v1455_v23 = vadd.f32 %v1423_v15, %v1166_v22 }
 0x348   :  { %v1453_v16 = vadd.f32 %v1421_v24, %v1164_v3 }
 0x349   :  { %v1473_v4 = vpack.c.bf16 %v1455_v23, %v1454_v2 }
 0x34a   :  { %v1472_v5 = vpack.c.bf16 %v1453_v16, %v1452_v17 }
 0x34c   :  { %2115 = vmatprep.mubr.bf16.mxu0 %v1472_v5 }
 0x34d   :  { %2116 = vmatmul.mubr.bf16.gmra.mrb[104].mxu0 %v1473_v4 }
 0x350   :  { %v2039_v31 = vpop.f32.mrb[76].mxu0 }
 0x351   :  { %v1133_v35 = vadd.f32 %v2039_v31, %v2811_v32  ;;  %v1124_v36 = vpop.f32.mrb[77].mxu0 }
 0x352   :  { %v1125_v38 = vadd.f32 %v2811_v32, %v1124_v36  ;;  %v2040_v8 = vpop.f32.mrb[78].mxu0 }
 0x353   :  { %v1169_v27 = vmax.f32 %v1133_v35, 0.0  ;;  %v1136_v10 = vadd.f32 %v2040_v8, %v2811_v32  ;;  %v1127_v39 = vpop.f32.mrb[79].mxu0 }
 0x354   :  { %v1167_v14 = vmax.f32 %v1125_v38, 0.0  ;;  %v1128_v40 = vadd.f32 %v2811_v32, %v1127_v39 }
 0x355   :  { %v1458_v41 = vadd.f32 %v1426_v33, %v1169_v27  ;;  %v1170_v28 = vmax.f32 %v1136_v10, 0.0 }
 0x356   :  { %v1456_v42 = vadd.f32 %v1424_v37, %v1167_v14  ;;  %v1168_v56 = vmax.f32 %v1128_v40, 0.0 }
 0x357   :  { %v1459_v0 = vadd.f32 %v1427_v11, %v1170_v28 }
 0x358   :  { %v1457_v52 = vadd.f32 %v1425_v9, %v1168_v56 }
 0x359   :  { %v1475_v43 = vpack.c.bf16 %v1459_v0, %v1458_v41 }
 0x35a   :  { %v1474_v29 = vpack.c.bf16 %v1457_v52, %v1456_v42 }
 0x35c   :  { %2119 = vmatprep.mubr.bf16.mxu0 %v1474_v29 }
 0x35d   :  { %2120 = vmatmul.mubr.bf16.gmra.mrb[108].mxu0 %v1475_v43 }
 0x3c0   :  { %v2093_v20 = vpop.f32.mrb[80].mxu0 }
 0x3c1   :  { %v1590_v32 = vadd.f32 %v2093_v20, %v2903_v30  ;;  %v1581_v19 = vpop.f32.mrb[81].mxu0 }
 0x3c2   :  { %v1582_v44 = vadd.f32 %v2903_v30, %v1581_v19  ;;  %v2094_v45 = vpop.f32.mrb[82].mxu0 }
 0x3c3   :  { %1711 = vst.msk [vmem:[%s3077_s12 + $0x10] sm:$0xff] %vm1708_vm1, %v1590_v32  ;;  %v1593_v26 = vadd.f32 %v2094_v45, %v2903_v30  ;;  %v1584_v46 = vpop.f32.mrb[83].mxu0 }
 0x3c4   :  { %1709 = vst.msk [vmem:[%s3077_s12] sm:$0xff] %vm1708_vm1, %v1582_v44  ;;  %v1585_v21 = vadd.f32 %v2903_v30, %v1584_v46 }
 0x3c5   :  { %1712 = vst.msk [vmem:[%s3077_s12 + $0x18] sm:$0xff] %vm1708_vm1, %v1593_v26 }
 0x3c6   :  { %1710 = vst.msk [vmem:[%s3077_s12 + $0x8] sm:$0xff] %vm1708_vm1, %v1585_v21 }
 0x3d0   :  { %v2097_v48 = vpop.f32.mrb[84].mxu0 }
 0x3d1   :  { %v1606_v49 = vadd.f32 %v2097_v48, %v2903_v30  ;;  %v1597_v51 = vpop.f32.mrb[85].mxu0 }
 0x3d2   :  { %v1598_v53 = vadd.f32 %v2903_v30, %v1597_v51  ;;  %v2098_v54 = vpop.f32.mrb[86].mxu0 }
 0x3d3   :  { %1715 = vst.msk [vmem:[%s3077_s12 + $0x30] sm:$0xff] %vm1708_vm1, %v1606_v49  ;;  %v1609_v55 = vadd.f32 %v2098_v54, %v2903_v30  ;;  %v1600_v57 = vpop.f32.mrb[87].mxu0 }
 0x3d4   :  { %1713 = vst.msk [vmem:[%s3077_s12 + $0x20] sm:$0xff] %vm1708_vm1, %v1598_v53  ;;  %v1601_v58 = vadd.f32 %v2903_v30, %v1600_v57 }
 0x3d5   :  { %1716 = vst.msk [vmem:[%s3077_s12 + $0x38] sm:$0xff] %vm1708_vm1, %v1609_v55 }
 0x3d6   :  { %1714 = vst.msk [vmem:[%s3077_s12 + $0x28] sm:$0xff] %vm1708_vm1, %v1601_v58 }
 0x3e0   :  { %v2101_v59 = vpop.f32.mrb[88].mxu0 }
 0x3e1   :  { %v1622_v60 = vadd.f32 %v2101_v59, %v2903_v30  ;;  %v1613_v61 = vpop.f32.mrb[89].mxu0 }
 0x3e2   :  { %v1614_v12 = vadd.f32 %v2903_v30, %v1613_v61  ;;  %v2102_v62 = vpop.f32.mrb[90].mxu0 }
 0x3e3   :  { %1719 = vst.msk [vmem:[%s3077_s12 + $0x50] sm:$0xff] %vm1708_vm1, %v1622_v60  ;;  %v1625_v13 = vadd.f32 %v2102_v62, %v2903_v30  ;;  %v1616_v63 = vpop.f32.mrb[91].mxu0 }
 0x3e4   :  { %1717 = vst.msk [vmem:[%s3077_s12 + $0x40] sm:$0xff] %vm1708_vm1, %v1614_v12  ;;  %v1617_v18 = vadd.f32 %v2903_v30, %v1616_v63 }
 0x3e5   :  { %1720 = vst.msk [vmem:[%s3077_s12 + $0x58] sm:$0xff] %vm1708_vm1, %v1625_v13 }
 0x3e6   :  { %1718 = vst.msk [vmem:[%s3077_s12 + $0x48] sm:$0xff] %vm1708_vm1, %v1617_v18 }
 0x3f0   :  { %v2105_v15 = vpop.f32.mrb[92].mxu0 }
 0x3f1   :  { %v1638_v47 = vadd.f32 %v2105_v15, %v2903_v30  ;;  %v1629_v1 = vpop.f32.mrb[93].mxu0 }
 0x3f2   :  { %v1630_v50 = vadd.f32 %v2903_v30, %v1629_v1  ;;  %v2106_v24 = vpop.f32.mrb[94].mxu0 }
 0x3f3   :  { %1723 = vst.msk [vmem:[%s3077_s12 + $0x70] sm:$0xff] %vm1708_vm1, %v1638_v47  ;;  %v1641_v2 = vadd.f32 %v2106_v24, %v2903_v30  ;;  %v1632_v22 = vpop.f32.mrb[95].mxu0 }
 0x3f4   :  { %1721 = vst.msk [vmem:[%s3077_s12 + $0x60] sm:$0xff] %vm1708_vm1, %v1630_v50  ;;  %v1633_v17 = vadd.f32 %v2903_v30, %v1632_v22 }
 0x3f5   :  { %1724 = vst.msk [vmem:[%s3077_s12 + $0x78] sm:$0xff] %vm1708_vm1, %v1641_v2 }
 0x3f6   :  { %1722 = vst.msk [vmem:[%s3077_s12 + $0x68] sm:$0xff] %vm1708_vm1, %v1633_v17 }
 0x400   :  { %v2109_v3 = vpop.f32.mrb[96].mxu0 }
 0x401   :  { %v1654_v23 = vadd.f32 %v2109_v3, %v2903_v30  ;;  %v1645_v16 = vpop.f32.mrb[97].mxu0 }
 0x402   :  { %v1646_v4 = vadd.f32 %v2903_v30, %v1645_v16  ;;  %v2110_v5 = vpop.f32.mrb[98].mxu0 }
 0x403   :  { %1727 = vst.msk [vmem:[%s3077_s12 + $0x90] sm:$0xff] %vm1708_vm1, %v1654_v23  ;;  %v1657_v25 = vadd.f32 %v2110_v5, %v2903_v30  ;;  %v1648_v6 = vpop.f32.mrb[99].mxu0 }
 0x404   :  { %1725 = vst.msk [vmem:[%s3077_s12 + $0x80] sm:$0xff] %vm1708_vm1, %v1646_v4  ;;  %v1649_v31 = vadd.f32 %v2903_v30, %v1648_v6 }
 0x405   :  { %1728 = vst.msk [vmem:[%s3077_s12 + $0x98] sm:$0xff] %vm1708_vm1, %v1657_v25 }
 0x406   :  { %1726 = vst.msk [vmem:[%s3077_s12 + $0x88] sm:$0xff] %vm1708_vm1, %v1649_v31 }
 0x410   :  { %v2113_v33 = vpop.f32.mrb[100].mxu0 }
 0x411   :  { %v1670_v34 = vadd.f32 %v2113_v33, %v2903_v30  ;;  %v1661_v35 = vpop.f32.mrb[101].mxu0 }
 0x412   :  { %v1662_v36 = vadd.f32 %v2903_v30, %v1661_v35  ;;  %v2114_v37 = vpop.f32.mrb[102].mxu0 }
 0x413   :  { %1731 = vst.msk [vmem:[%s3077_s12 + $0xb0] sm:$0xff] %vm1708_vm1, %v1670_v34  ;;  %v1673_v7 = vadd.f32 %v2114_v37, %v2903_v30  ;;  %v1664_v38 = vpop.f32.mrb[103].mxu0 }
 0x414   :  { %1729 = vst.msk [vmem:[%s3077_s12 + $0xa0] sm:$0xff] %vm1708_vm1, %v1662_v36  ;;  %v1665_v8 = vadd.f32 %v2903_v30, %v1664_v38 }
 0x415   :  { %1732 = vst.msk [vmem:[%s3077_s12 + $0xb8] sm:$0xff] %vm1708_vm1, %v1673_v7 }
 0x416   :  { %1730 = vst.msk [vmem:[%s3077_s12 + $0xa8] sm:$0xff] %vm1708_vm1, %v1665_v8 }
 0x420   :  { %v2117_v27 = vpop.f32.mrb[104].mxu0 }
 0x421   :  { %v1686_v10 = vadd.f32 %v2117_v27, %v2903_v30  ;;  %v1677_v39 = vpop.f32.mrb[105].mxu0 }
 0x422   :  { %v1678_v14 = vadd.f32 %v2903_v30, %v1677_v39  ;;  %v2118_v40 = vpop.f32.mrb[106].mxu0 }
 0x423   :  { %1735 = vst.msk [vmem:[%s3077_s12 + $0xd0] sm:$0xff] %vm1708_vm1, %v1686_v10  ;;  %v1689_v11 = vadd.f32 %v2118_v40, %v2903_v30  ;;  %v1680_v41 = vpop.f32.mrb[107].mxu0 }
 0x424   :  { %1733 = vst.msk [vmem:[%s3077_s12 + $0xc0] sm:$0xff] %vm1708_vm1, %v1678_v14  ;;  %v1681_v28 = vadd.f32 %v2903_v30, %v1680_v41 }
 0x425   :  { %1736 = vst.msk [vmem:[%s3077_s12 + $0xd8] sm:$0xff] %vm1708_vm1, %v1689_v11 }
 0x426   :  { %1734 = vst.msk [vmem:[%s3077_s12 + $0xc8] sm:$0xff] %vm1708_vm1, %v1681_v28 }
 0x430   :  { %v2121_v9 = vpop.f32.mrb[108].mxu0 }
 0x431   :  { %v1702_v42 = vadd.f32 %v2121_v9, %v2903_v30  ;;  %v1693_v56 = vpop.f32.mrb[109].mxu0 }
 0x432   :  { %v1694_v0 = vadd.f32 %v2903_v30, %v1693_v56  ;;  %v2122_v52 = vpop.f32.mrb[110].mxu0 }
 0x433   :  { %1739 = vst.msk [vmem:[%s3077_s12 + $0xf0] sm:$0xff] %vm1708_vm1, %v1702_v42  ;;  %v1705_v43 = vadd.f32 %v2122_v52, %v2903_v30  ;;  %v1696_v29 = vpop.f32.mrb[111].mxu0 }
 0x434   :  { %1737 = vst.msk [vmem:[%s3077_s12 + $0xe0] sm:$0xff] %vm1708_vm1, %v1694_v0  ;;  %v1697_v20 = vadd.f32 %v2903_v30, %v1696_v29 }
 0x435   :  { %1740 = vst.msk [vmem:[%s3077_s12 + $0xf8] sm:$0xff] %vm1708_vm1, %v1705_v43 }
 0x436   :  { %1738 = vst.msk [vmem:[%s3077_s12 + $0xe8] sm:$0xff] %vm1708_vm1, %v1697_v20 }
 0x437   :  { %1745 = vsyncpa [#allocation3], 1 }
 0x438   :  { %1746 = vsyncpa [#allocation5], 1 }

</bundles_post_ra>
